<compile_context>
chip_gen: v6e
topology: v6e:2x2x1
jax: 0.10.0
libtpu: 0.0.40
codegen_flags: <defaults>
</compile_context>

<pallas_src>
import functools

import jax
import jax.numpy as jnp
from jax import lax
from jax.experimental import pallas as pl
from jax.experimental.pallas import tpu as pltpu

LANE = 128  # f32 lane width
SUB = 8     # f32 sublane count


def _round_up(x, m):
    return (x + m - 1) // m * m


def lstm_chunk_kernel(lens_ref, x_ref, wih_ref, whh_ref, b_ref, fcw_ref,
                      fcb_ref, out_ref, h_scr, c_scr, hend_scr, gx_scr, *, hp):
    """Grid = (batch_blocks [parallel], time_chunks [arbitrary/serial]).

    lens_ref : (Bblk, 1)           i32   lengths (clamped to [1, T])
    x_ref    : (chunk*Bblk, D)     bf16  rows ordered (t, b) within the chunk
    wih_ref  : (D, 4*Hp)           bf16  gate-padded W_ih^T       (resident)
    whh_ref  : (Hp, 4*Hp)          bf16  gate-padded W_hh^T       (resident)
    b_ref    : (1, 4*Hp)           f32   bias_ih + bias_hh        (resident)
    fcw_ref  : (Hp, Op)            bf16  fc.weight^T (padded)     (resident)
    fcb_ref  : (1, Op)             f32                            (resident)
    out_ref  : (Bblk, Op)          f32   lane-dense output
    h/c/hend_scr : (Bblk, Hp)      f32   recurrent state (kept f32 on purpose)
    gx_scr   : (chunk*Bblk, 4*Hp)  f32   per-chunk input projection
    """
    c_idx = pl.program_id(1)
    bblk = h_scr.shape[0]
    chunk = x_ref.shape[0] // bblk

    @pl.when(c_idx == 0)
    def _init():
        h_scr[...] = jnp.zeros_like(h_scr)
        c_scr[...] = jnp.zeros_like(c_scr)
        hend_scr[...] = jnp.zeros_like(hend_scr)

    # Whole-chunk input projection as ONE bf16 MXU matmul (f32 accumulate),
    # bias folded once per chunk.
    gx_scr[...] = (jnp.dot(x_ref[...], wih_ref[...],
                           preferred_element_type=jnp.float32) + b_ref[...])

    lens_m1 = lens_ref[...] - 1          # (Bblk, 1), hoisted out of the loop
    whh = whh_ref[...]                   # resident bf16 recurrent weights
    t0 = c_idx * chunk

    def step(t, carry):
        h, c, hend = carry
        row = pl.multiple_of(t * bblk, bblk)
        # Only the serial part stays in the loop: h @ W_hh (bf16 operands,
        # f32 accumulate) + elementwise gate math in f32.
        gates = gx_scr[pl.ds(row, bblk), :] + jnp.dot(
            h.astype(jnp.bfloat16), whh, preferred_element_type=jnp.float32)
        # 128-lane-aligned gate slices (PyTorch order: i, f, g, o).
        i_g = jax.nn.sigmoid(gates[:, 0 * hp:1 * hp])
        f_g = jax.nn.sigmoid(gates[:, 1 * hp:2 * hp])
        g_g = jnp.tanh(gates[:, 2 * hp:3 * hp])
        o_g = jax.nn.sigmoid(gates[:, 3 * hp:4 * hp])
        c = f_g * c + i_g * g_g
        h = o_g * jnp.tanh(c)
        hend = jnp.where(lens_m1 == t0 + t, h, hend)
        return h, c, hend

    # Bounded unroll: keeps LLO scheduling visibility without blowing up vreg
    # live ranges / code size when chunk grows to 32-128.
    h, c, hend = lax.fori_loop(
        0, chunk, step, (h_scr[...], c_scr[...], hend_scr[...]),
        unroll=min(chunk, 8))

    # Single VMEM writeback per chunk (state persists to the next grid step).
    h_scr[...] = h
    c_scr[...] = c
    hend_scr[...] = hend

    @pl.when(c_idx == pl.num_programs(1) - 1)
    def _finalize():
        # Dropout(p=0.0) is the identity; go straight to the FC layer.
        out_ref[...] = (jnp.dot(hend.astype(jnp.bfloat16), fcw_ref[...],
                                preferred_element_type=jnp.float32)
                        + fcb_ref[...])


def _pad_gates(w, h, hp):
    """Pad a PyTorch-layout gate-stacked (4*h, ...) tensor to (4*hp, ...)."""
    g = w.reshape((4, h) + w.shape[1:])
    pad = [(0, 0), (0, hp - h)] + [(0, 0)] * (w.ndim - 1)
    g = jnp.pad(g, pad)
    return g.reshape((4 * hp,) + w.shape[1:])


def init_params(key, input_size, hidden_size, output_size):
    """Deterministic synthetic parameters in PyTorch shapes."""
    ks = jax.random.split(key, 6)
    s = 0.1
    return {
        "w_ih": s * jax.random.normal(ks[0], (4 * hidden_size, input_size), jnp.float32),
        "w_hh": s * jax.random.normal(ks[1], (4 * hidden_size, hidden_size), jnp.float32),
        "b_ih": s * jax.random.normal(ks[2], (4 * hidden_size,), jnp.float32),
        "b_hh": s * jax.random.normal(ks[3], (4 * hidden_size,), jnp.float32),
        "fc_w": s * jax.random.normal(ks[4], (output_size, hidden_size), jnp.float32),
        "fc_b": s * jax.random.normal(ks[5], (output_size,), jnp.float32),
    }


def custom_lstm_forward(x, lengths, params, *, chunk=64, batch_tile=64):
    B, T, D = x.shape
    H = params["w_hh"].shape[1]
    O = params["fc_w"].shape[0]
    f32, bf16 = jnp.float32, jnp.bfloat16

    Hp = _round_up(H, LANE)          # lane-aligned per-gate width
    Op = _round_up(O, LANE)          # lane-dense output width

    # ---- batch tiling: Bblk rows per grid block; the leading 'parallel' axis
    # lets v7x's two TensorCores split independent batch blocks. ----
    Bp = _round_up(B, SUB)
    Bblk = min(Bp, _round_up(batch_tile, SUB))
    Bp = _round_up(Bp, Bblk)
    num_bblocks = Bp // Bblk

    # ---- time chunking: prefer chunk | T so there are no dead tail timesteps.
    req = max(1, min(chunk, T))
    best = req
    while T % best:
        best -= 1
    if best >= min(req, SUB) or T <= SUB:
        chunk = best                               # exact divisor of T
    else:
        chunk = -(-T // (-(-T // req)))            # awkward T: balanced chunks, tiny tail
    Tp = _round_up(T, chunk)
    num_chunks = Tp // chunk

    # ---- weights, gate-padded; MXU operands cast to bf16 (padded lanes stay 0).
    wih_t = _pad_gates(params["w_ih"].astype(f32), H, Hp).T.astype(bf16)      # (D, 4Hp)
    whh_p = _pad_gates(params["w_hh"].astype(f32), H, Hp)                     # (4Hp, H)
    whh_t = jnp.pad(whh_p, ((0, 0), (0, Hp - H))).T.astype(bf16)              # (Hp, 4Hp)
    bias = _pad_gates((params["b_ih"] + params["b_hh"]).astype(f32), H, Hp)
    bias = bias.reshape(1, 4 * Hp)                                            # f32
    fcw_t = jnp.pad(params["fc_w"].astype(f32),
                    ((0, Op - O), (0, Hp - H))).T.astype(bf16)                # (Hp, Op)
    fcb = jnp.pad(params["fc_b"].astype(f32), (0, Op - O)).reshape(1, Op)     # f32

    # ---- x: bf16 cast fused into the relayout (halves copy + streamed DMA).
    # Final HBM layout: (num_bblocks, Tp*Bblk, D), rows of a block ordered (t, b),
    # so each grid step reads one lane/sublane-clean 2-D (chunk*Bblk, D) slab.
    x_tbd = jnp.transpose(x.astype(bf16), (1, 0, 2))                          # (T, B, D)
    x_tbd = jnp.pad(x_tbd, ((0, Tp - T), (0, Bp - B), (0, 0)))                # (Tp, Bp, D)
    x_blk = (x_tbd.reshape(Tp, num_bblocks, Bblk, D)
             .transpose(1, 0, 2, 3)
             .reshape(num_bblocks, Tp * Bblk, D))

    # Clamp like take_along_dim clip semantics (PyTorch would raise for OOB).
    lens = jnp.clip(lengths.astype(jnp.int32), 1, T)
    lens = jnp.pad(lens, (0, Bp - B), constant_values=1).reshape(Bp, 1)

    # ---- VMEM footprint actually resident in the kernel (bytes). ----
    vmem_est = (
        2 * chunk * Bblk * D * 2                              # streamed x, 2 buffers, bf16
        + (D * 4 * Hp + Hp * 4 * Hp + Hp * Op) * 2            # single-buffered bf16 weights
        + (4 * Hp + Op) * 4                                   # f32 biases
        + 2 * Bblk * 4                                        # lengths block
        + 2 * Bblk * Op * 4                                   # output block
        + (3 * Bblk * Hp + chunk * Bblk * 4 * Hp) * 4)        # scratch (state + gx)
    # v7x has 64 MiB VMEM/TC: the chunk/Bblk choice must keep vmem_est under
    # ~48-56 MiB there; v5e/v6e (128 MiB) can go toward ~100 MiB.
    vmem_limit = int(min(max(32 * 1024 * 1024, vmem_est * 3 // 2),
                         100 * 1024 * 1024))

    cost = pl.CostEstimate(
        flops=2 * Tp * Bp * (D + Hp) * 4 * Hp + 2 * Bp * Hp * Op,
        transcendentals=5 * Tp * Bp * Hp,
        bytes_accessed=(Tp * Bp * D * 2
                        + (D * 4 * Hp + Hp * 4 * Hp + Hp * Op) * 2
                        + (4 * Hp + Op) * 4 + Bp * 4 + Bp * Op * 4),
    )

    resident = dict(pipeline_mode=pl.Buffered(1))   # constant index_map: 1 buffer, 1 DMA

    out_padded = pl.pallas_call(
        functools.partial(lstm_chunk_kernel, hp=Hp),
        out_shape=jax.ShapeDtypeStruct((Bp, Op), f32),
        grid=(num_bblocks, num_chunks),
        in_specs=[
            pl.BlockSpec((Bblk, 1), lambda bb, c: (bb, 0)),                 # lengths
            pl.BlockSpec((None, chunk * Bblk, D), lambda bb, c: (bb, c, 0)),# x, streamed over T
            pl.BlockSpec((D, 4 * Hp), lambda bb, c: (0, 0), **resident),    # W_ih^T
            pl.BlockSpec((Hp, 4 * Hp), lambda bb, c: (0, 0), **resident),   # W_hh^T
            pl.BlockSpec((1, 4 * Hp), lambda bb, c: (0, 0), **resident),    # bias
            pl.BlockSpec((Hp, Op), lambda bb, c: (0, 0), **resident),       # fc W^T
            pl.BlockSpec((1, Op), lambda bb, c: (0, 0), **resident),        # fc b
        ],
        out_specs=pl.BlockSpec((Bblk, Op), lambda bb, c: (bb, 0)),
        scratch_shapes=[
            pltpu.VMEM((Bblk, Hp), f32),                 # h_t
            pltpu.VMEM((Bblk, Hp), f32),                 # c_t
            pltpu.VMEM((Bblk, Hp), f32),                 # h at lengths-1
            pltpu.VMEM((chunk * Bblk, 4 * Hp), f32),     # per-chunk gate precompute
        ],
        compiler_params=pltpu.CompilerParams(
            dimension_semantics=("parallel", "arbitrary"),  # batch || , T serial
            vmem_limit_bytes=vmem_limit,
        ),
        cost_estimate=cost,
    )(lens, x_blk, wih_t, whh_t, bias, fcw_t, fcb)

    out = out_padded[:B, :O]
    if O == 1:                                   # torch's .squeeze(-1)
        out = out[:, 0]
    return out


def reference_forward(x, lengths, params, matmul_dtype=jnp.float32):
    """Plain-JAX reference identical to the PyTorch forward (unidirectional).

    matmul_dtype lets us emulate the kernel's bf16-operand / f32-accumulate
    matmul policy for a tight numerical comparison.
    """
    B, T, D = x.shape
    H = params["w_hh"].shape[1]
    wih_t = params["w_ih"].T
    whh_t = params["w_hh"].T
    bias = params["b_ih"] + params["b_hh"]

    def mm(a, b):
        return jnp.dot(a.astype(matmul_dtype), b.astype(matmul_dtype),
                       preferred_element_type=jnp.float32)

    def step(carry, x_t):
        h, c = carry
        gates = mm(x_t, wih_t) + mm(h, whh_t) + bias
        i = jax.nn.sigmoid(gates[:, 0 * H:1 * H])
        f = jax.nn.sigmoid(gates[:, 1 * H:2 * H])
        g = jnp.tanh(gates[:, 2 * H:3 * H])
        o = jax.nn.sigmoid(gates[:, 3 * H:4 * H])
        c = f * c + i * g
        h = o * jnp.tanh(c)
        return (h, c), h

    h0 = jnp.zeros((B, H), jnp.float32)
    c0 = jnp.zeros((B, H), jnp.float32)
    _, hs = lax.scan(step, (h0, c0), jnp.transpose(x, (1, 0, 2)))  # (T, B, H)
    hs = jnp.transpose(hs, (1, 0, 2))                              # (B, T, H)
    end = jnp.take_along_axis(hs, (lengths - 1)[:, None, None], axis=1)[:, 0, :]
    out = mm(end, params["fc_w"].T) + params["fc_b"]
    if out.shape[-1] == 1:
        out = out[:, 0]
    return out


if __name__ == "__main__":
    # Small shapes consistent with the module's forward:
    #   x: (batch=2, seq=8, input_size=16), hidden=32, output_size=10 classes.
    B, T, D, H, O = 2, 8, 16, 32, 10

    key = jax.random.PRNGKey(0)
    kx, kp = jax.random.split(key)
    x = jax.random.normal(kx, (B, T, D), jnp.float32)
    lengths = jnp.array([8, 5], dtype=jnp.int32)
    params = init_params(kp, D, H, O)

    out = custom_lstm_forward(x, lengths, params)
    out = jax.block_until_ready(out)

    ref_bf16 = reference_forward(x, lengths, params, matmul_dtype=jnp.bfloat16)
    ref_f32 = reference_forward(x, lengths, params, matmul_dtype=jnp.float32)

    assert out.shape == (B, O), out.shape
    # Tight check vs a reference using the same bf16-operand / f32-accumulate policy.
    assert jnp.allclose(out, ref_bf16, atol=1e-4, rtol=1e-4), (out, ref_bf16)
    # Looser check vs the pure-f32 reference (bf16 MXU operand rounding).
    assert jnp.allclose(out, ref_f32, atol=2e-2, rtol=2e-2), (out, ref_f32)

    print("KERNEL_OK")
</pallas_src>

<mosaic_0001>
module attributes {stable_mosaic.version = 11 : i64} {
  func.func @lstm_chunk_kernel(%arg0: i32, %arg1: i32, %arg2: memref<8x1xi32, #tpu.memory_space<vmem>>, %arg3: memref<1x64x16xbf16, #tpu.memory_space<vmem>>, %arg4: memref<16x512xbf16, #tpu.memory_space<vmem>>, %arg5: memref<128x512xbf16, #tpu.memory_space<vmem>>, %arg6: memref<1x512xf32, #tpu.memory_space<vmem>>, %arg7: memref<128x128xbf16, #tpu.memory_space<vmem>>, %arg8: memref<1x128xf32, #tpu.memory_space<vmem>>, %arg9: memref<8x128xf32, #tpu.memory_space<vmem>>, %arg10: memref<8x128xf32, #tpu.memory_space<vmem>>, %arg11: memref<8x128xf32, #tpu.memory_space<vmem>>, %arg12: memref<8x128xf32, #tpu.memory_space<vmem>>, %arg13: memref<64x512xf32, #tpu.memory_space<vmem>>) attributes {dimension_semantics = [#tpu.dimension_semantics<parallel>, #tpu.dimension_semantics<arbitrary>], iteration_bounds = array<i64: 1, 1>, scalar_prefetch = 0 : i64, scratch_operands = 4 : i64, tpu.core_type = #tpu.core_type<tc>, window_params = [{transform_indices = @transform_0, window_bounds = array<i64: 8, 1>}, {transform_indices = @transform_1, window_bounds = array<i64: 1, 64, 16>}, {pipeline_mode = #tpu.pipeline_mode<synchronous>, transform_indices = @transform_2, window_bounds = array<i64: 16, 512>}, {pipeline_mode = #tpu.pipeline_mode<synchronous>, transform_indices = @transform_3, window_bounds = array<i64: 128, 512>}, {pipeline_mode = #tpu.pipeline_mode<synchronous>, transform_indices = @transform_4, window_bounds = array<i64: 1, 512>}, {pipeline_mode = #tpu.pipeline_mode<synchronous>, transform_indices = @transform_5, window_bounds = array<i64: 128, 128>}, {pipeline_mode = #tpu.pipeline_mode<synchronous>, transform_indices = @transform_6, window_bounds = array<i64: 1, 128>}, {transform_indices = @transform_7, window_bounds = array<i64: 8, 128>}]} {
    %c0_i32 = arith.constant 0 : i32
    %0 = arith.cmpi eq, %arg1, %c0_i32 : i32
    %1 = arith.extui %0 : i1 to i32
    %c0_i32_0 = arith.constant 0 : i32
    %2 = arith.cmpi ne, %1, %c0_i32_0 : i32
    scf.if %2 {
      %cst_78 = arith.constant 0.000000e+00 : f32
      %329 = vector.broadcast %cst_78 : f32 to vector<8x128xf32>
      %c0_79 = arith.constant 0 : index
      %c0_80 = arith.constant 0 : index
      %330 = vector.load %arg10[%c0_79, %c0_80] : memref<8x128xf32, #tpu.memory_space<vmem>>, vector<8x128xf32>
      tpu.vector_store %arg10[%c0_79, %c0_80], %329 {strides = array<i32>} : memref<8x128xf32, #tpu.memory_space<vmem>>, vector<8x128xf32>,
      %cst_81 = arith.constant 0.000000e+00 : f32
      %331 = vector.broadcast %cst_81 : f32 to vector<8x128xf32>
      %c0_82 = arith.constant 0 : index
      %c0_83 = arith.constant 0 : index
      %332 = vector.load %arg11[%c0_82, %c0_83] : memref<8x128xf32, #tpu.memory_space<vmem>>, vector<8x128xf32>
      tpu.vector_store %arg11[%c0_82, %c0_83], %331 {strides = array<i32>} : memref<8x128xf32, #tpu.memory_space<vmem>>, vector<8x128xf32>,
      %cst_84 = arith.constant 0.000000e+00 : f32
      %333 = vector.broadcast %cst_84 : f32 to vector<8x128xf32>
      %c0_85 = arith.constant 0 : index
      %c0_86 = arith.constant 0 : index
      %334 = vector.load %arg12[%c0_85, %c0_86] : memref<8x128xf32, #tpu.memory_space<vmem>>, vector<8x128xf32>
      tpu.vector_store %arg12[%c0_85, %c0_86], %333 {strides = array<i32>} : memref<8x128xf32, #tpu.memory_space<vmem>>, vector<8x128xf32>,
    } else {
    }
    %c0 = arith.constant 0 : index
    %c0_1 = arith.constant 0 : index
    %c0_2 = arith.constant 0 : index
    %3 = vector.load %arg3[%c0, %c0_1, %c0_2] : memref<1x64x16xbf16, #tpu.memory_space<vmem>>, vector<1x64x16xbf16>
    %4 = vector.shape_cast %3 : vector<1x64x16xbf16> to vector<64x16xbf16>
    %c0_3 = arith.constant 0 : index
    %c0_4 = arith.constant 0 : index
    %5 = vector.load %arg4[%c0_3, %c0_4] : memref<16x512xbf16, #tpu.memory_space<vmem>>, vector<16x512xbf16>
    %cst = arith.constant dense<0.000000e+00> : vector<64x512xf32>
    %6 = tpu.matmul %4, %5, %cst {dimension_numbers = #tpu.dot_dimension_numbers<[1], [0], [0], [1], [0, 0, 1, 1], [], []>} : vector<64x16xbf16>, vector<16x512xbf16>, vector<64x512xf32> -> vector<64x512xf32>
    %c0_5 = arith.constant 0 : index
    %c0_6 = arith.constant 0 : index
    %7 = vector.load %arg6[%c0_5, %c0_6] : memref<1x512xf32, #tpu.memory_space<vmem>>, vector<1x512xf32>
    %8 = vector.broadcast %7 : vector<1x512xf32> to vector<64x512xf32>
    %9 = arith.addf %6, %8 : vector<64x512xf32>
    %c0_7 = arith.constant 0 : index
    %c0_8 = arith.constant 0 : index
    %10 = vector.load %arg13[%c0_7, %c0_8] : memref<64x512xf32, #tpu.memory_space<vmem>>, vector<64x512xf32>
    tpu.vector_store %arg13[%c0_7, %c0_8], %9 {strides = array<i32>} : memref<64x512xf32, #tpu.memory_space<vmem>>, vector<64x512xf32>,
    %c0_9 = arith.constant 0 : index
    %c0_10 = arith.constant 0 : index
    %11 = vector.load %arg2[%c0_9, %c0_10] : memref<8x1xi32, #tpu.memory_space<vmem>>, vector<8x1xi32>
    %c1_i32 = arith.constant 1 : i32
    %12 = vector.broadcast %c1_i32 : i32 to vector<8x1xi32>
    %13 = arith.subi %11, %12 : vector<8x1xi32>
    %c0_11 = arith.constant 0 : index
    %c0_12 = arith.constant 0 : index
    %14 = vector.load %arg5[%c0_11, %c0_12] : memref<128x512xbf16, #tpu.memory_space<vmem>>, vector<128x512xbf16>
    %c8_i32 = arith.constant 8 : i32
    %15 = arith.muli %arg1, %c8_i32 : i32
    %c0_13 = arith.constant 0 : index
    %c0_14 = arith.constant 0 : index
    %16 = vector.load %arg10[%c0_13, %c0_14] : memref<8x128xf32, #tpu.memory_space<vmem>>, vector<8x128xf32>
    %c0_15 = arith.constant 0 : index
    %c0_16 = arith.constant 0 : index
    %17 = vector.load %arg11[%c0_15, %c0_16] : memref<8x128xf32, #tpu.memory_space<vmem>>, vector<8x128xf32>
    %c0_17 = arith.constant 0 : index
    %c0_18 = arith.constant 0 : index
    %18 = vector.load %arg12[%c0_17, %c0_18] : memref<8x128xf32, #tpu.memory_space<vmem>>, vector<8x128xf32>
    %c0_i32_19 = arith.constant 0 : i32
    %c8_i32_20 = arith.constant 8 : i32
    %19 = arith.muli %c0_i32_19, %c8_i32_20 : i32
    %20 = tpu.assume_multiple %19, 8 : i32
    %21 = arith.index_cast %20 : i32 to index
    %c0_21 = arith.constant 0 : index
    %22 = vector.load %arg13[%21, %c0_21] : memref<64x512xf32, #tpu.memory_space<vmem>>, vector<8x512xf32>
    %23 = arith.truncf %16 : vector<8x128xf32> to vector<8x128xbf16>
    %cst_22 = arith.constant dense<0.000000e+00> : vector<8x512xf32>
    %24 = tpu.matmul %23, %14, %cst_22 {dimension_numbers = #tpu.dot_dimension_numbers<[1], [0], [0], [1], [0, 0, 1, 1], [], []>} : vector<8x128xbf16>, vector<128x512xbf16>, vector<8x512xf32> -> vector<8x512xf32>
    %25 = arith.addf %22, %24 : vector<8x512xf32>
    %26 = vector.extract_strided_slice %25 {offsets = [0, 0], sizes = [8, 128], strides = [1, 1]} : vector<8x512xf32> to vector<8x128xf32>
    %27 = arith.negf %26 : vector<8x128xf32>
    %28 = math.exp %27 : vector<8x128xf32>
    %cst_23 = arith.constant 1.000000e+00 : f32
    %29 = vector.broadcast %cst_23 : f32 to vector<8x128xf32>
    %30 = arith.addf %29, %28 : vector<8x128xf32>
    %31 = arith.divf %29, %30 : vector<8x128xf32>
    %32 = vector.extract_strided_slice %25 {offsets = [0, 128], sizes = [8, 128], strides = [1, 1]} : vector<8x512xf32> to vector<8x128xf32>
    %33 = arith.negf %32 : vector<8x128xf32>
    %34 = math.exp %33 : vector<8x128xf32>
    %cst_24 = arith.constant 1.000000e+00 : f32
    %35 = vector.broadcast %cst_24 : f32 to vector<8x128xf32>
    %36 = arith.addf %35, %34 : vector<8x128xf32>
    %37 = arith.divf %35, %36 : vector<8x128xf32>
    %38 = vector.extract_strided_slice %25 {offsets = [0, 256], sizes = [8, 128], strides = [1, 1]} : vector<8x512xf32> to vector<8x128xf32>
    %39 = math.tanh %38 : vector<8x128xf32>
    %40 = vector.extract_strided_slice %25 {offsets = [0, 384], sizes = [8, 128], strides = [1, 1]} : vector<8x512xf32> to vector<8x128xf32>
    %41 = arith.negf %40 : vector<8x128xf32>
    %42 = math.exp %41 : vector<8x128xf32>
    %cst_25 = arith.constant 1.000000e+00 : f32
    %43 = vector.broadcast %cst_25 : f32 to vector<8x128xf32>
    %44 = arith.addf %43, %42 : vector<8x128xf32>
    %45 = arith.divf %43, %44 : vector<8x128xf32>
    %46 = arith.mulf %37, %17 : vector<8x128xf32>
    %47 = arith.mulf %31, %39 : vector<8x128xf32>
    %48 = arith.addf %46, %47 : vector<8x128xf32>
    %49 = math.tanh %48 : vector<8x128xf32>
    %50 = arith.mulf %45, %49 : vector<8x128xf32>
    %51 = arith.addi %15, %c0_i32_19 : i32
    %52 = vector.broadcast %51 : i32 to vector<8x1xi32>
    %53 = arith.cmpi eq, %13, %52 : vector<8x1xi32>
    %54 = vector.shape_cast %53 : vector<8x1xi1> to vector<8x1xi1>
    %55 = vector.broadcast %54 : vector<8x1xi1> to vector<8x128xi1>
    %56 = arith.select %55, %50, %18 : vector<8x128xi1>, vector<8x128xf32>
    %c1_i32_26 = arith.constant 1 : i32
    %c8_i32_27 = arith.constant 8 : i32
    %57 = arith.muli %c1_i32_26, %c8_i32_27 : i32
    %58 = tpu.assume_multiple %57, 8 : i32
    %59 = arith.index_cast %58 : i32 to index
    %c0_28 = arith.constant 0 : index
    %60 = vector.load %arg13[%59, %c0_28] : memref<64x512xf32, #tpu.memory_space<vmem>>, vector<8x512xf32>
    %61 = arith.truncf %50 : vector<8x128xf32> to vector<8x128xbf16>
    %cst_29 = arith.constant dense<0.000000e+00> : vector<8x512xf32>
    %62 = tpu.matmul %61, %14, %cst_29 {dimension_numbers = #tpu.dot_dimension_numbers<[1], [0], [0], [1], [0, 0, 1, 1], [], []>} : vector<8x128xbf16>, vector<128x512xbf16>, vector<8x512xf32> -> vector<8x512xf32>
    %63 = arith.addf %60, %62 : vector<8x512xf32>
    %64 = vector.extract_strided_slice %63 {offsets = [0, 0], sizes = [8, 128], strides = [1, 1]} : vector<8x512xf32> to vector<8x128xf32>
    %65 = arith.negf %64 : vector<8x128xf32>
    %66 = math.exp %65 : vector<8x128xf32>
    %cst_30 = arith.constant 1.000000e+00 : f32
    %67 = vector.broadcast %cst_30 : f32 to vector<8x128xf32>
    %68 = arith.addf %67, %66 : vector<8x128xf32>
    %69 = arith.divf %67, %68 : vector<8x128xf32>
    %70 = vector.extract_strided_slice %63 {offsets = [0, 128], sizes = [8, 128], strides = [1, 1]} : vector<8x512xf32> to vector<8x128xf32>
    %71 = arith.negf %70 : vector<8x128xf32>
    %72 = math.exp %71 : vector<8x128xf32>
    %cst_31 = arith.constant 1.000000e+00 : f32
    %73 = vector.broadcast %cst_31 : f32 to vector<8x128xf32>
    %74 = arith.addf %73, %72 : vector<8x128xf32>
    %75 = arith.divf %73, %74 : vector<8x128xf32>
    %76 = vector.extract_strided_slice %63 {offsets = [0, 256], sizes = [8, 128], strides = [1, 1]} : vector<8x512xf32> to vector<8x128xf32>
    %77 = math.tanh %76 : vector<8x128xf32>
    %78 = vector.extract_strided_slice %63 {offsets = [0, 384], sizes = [8, 128], strides = [1, 1]} : vector<8x512xf32> to vector<8x128xf32>
    %79 = arith.negf %78 : vector<8x128xf32>
    %80 = math.exp %79 : vector<8x128xf32>
    %cst_32 = arith.constant 1.000000e+00 : f32
    %81 = vector.broadcast %cst_32 : f32 to vector<8x128xf32>
    %82 = arith.addf %81, %80 : vector<8x128xf32>
    %83 = arith.divf %81, %82 : vector<8x128xf32>
    %84 = arith.mulf %75, %48 : vector<8x128xf32>
    %85 = arith.mulf %69, %77 : vector<8x128xf32>
    %86 = arith.addf %84, %85 : vector<8x128xf32>
    %87 = math.tanh %86 : vector<8x128xf32>
    %88 = arith.mulf %83, %87 : vector<8x128xf32>
    %89 = arith.addi %15, %c1_i32_26 : i32
    %90 = vector.broadcast %89 : i32 to vector<8x1xi32>
    %91 = arith.cmpi eq, %13, %90 : vector<8x1xi32>
    %92 = vector.shape_cast %91 : vector<8x1xi1> to vector<8x1xi1>
    %93 = vector.broadcast %92 : vector<8x1xi1> to vector<8x128xi1>
    %94 = arith.select %93, %88, %56 : vector<8x128xi1>, vector<8x128xf32>
    %c2_i32 = arith.constant 2 : i32
    %c8_i32_33 = arith.constant 8 : i32
    %95 = arith.muli %c2_i32, %c8_i32_33 : i32
    %96 = tpu.assume_multiple %95, 8 : i32
    %97 = arith.index_cast %96 : i32 to index
    %c0_34 = arith.constant 0 : index
    %98 = vector.load %arg13[%97, %c0_34] : memref<64x512xf32, #tpu.memory_space<vmem>>, vector<8x512xf32>
    %99 = arith.truncf %88 : vector<8x128xf32> to vector<8x128xbf16>
    %cst_35 = arith.constant dense<0.000000e+00> : vector<8x512xf32>
    %100 = tpu.matmul %99, %14, %cst_35 {dimension_numbers = #tpu.dot_dimension_numbers<[1], [0], [0], [1], [0, 0, 1, 1], [], []>} : vector<8x128xbf16>, vector<128x512xbf16>, vector<8x512xf32> -> vector<8x512xf32>
    %101 = arith.addf %98, %100 : vector<8x512xf32>
    %102 = vector.extract_strided_slice %101 {offsets = [0, 0], sizes = [8, 128], strides = [1, 1]} : vector<8x512xf32> to vector<8x128xf32>
    %103 = arith.negf %102 : vector<8x128xf32>
    %104 = math.exp %103 : vector<8x128xf32>
    %cst_36 = arith.constant 1.000000e+00 : f32
    %105 = vector.broadcast %cst_36 : f32 to vector<8x128xf32>
    %106 = arith.addf %105, %104 : vector<8x128xf32>
    %107 = arith.divf %105, %106 : vector<8x128xf32>
    %108 = vector.extract_strided_slice %101 {offsets = [0, 128], sizes = [8, 128], strides = [1, 1]} : vector<8x512xf32> to vector<8x128xf32>
    %109 = arith.negf %108 : vector<8x128xf32>
    %110 = math.exp %109 : vector<8x128xf32>
    %cst_37 = arith.constant 1.000000e+00 : f32
    %111 = vector.broadcast %cst_37 : f32 to vector<8x128xf32>
    %112 = arith.addf %111, %110 : vector<8x128xf32>
    %113 = arith.divf %111, %112 : vector<8x128xf32>
    %114 = vector.extract_strided_slice %101 {offsets = [0, 256], sizes = [8, 128], strides = [1, 1]} : vector<8x512xf32> to vector<8x128xf32>
    %115 = math.tanh %114 : vector<8x128xf32>
    %116 = vector.extract_strided_slice %101 {offsets = [0, 384], sizes = [8, 128], strides = [1, 1]} : vector<8x512xf32> to vector<8x128xf32>
    %117 = arith.negf %116 : vector<8x128xf32>
    %118 = math.exp %117 : vector<8x128xf32>
    %cst_38 = arith.constant 1.000000e+00 : f32
    %119 = vector.broadcast %cst_38 : f32 to vector<8x128xf32>
    %120 = arith.addf %119, %118 : vector<8x128xf32>
    %121 = arith.divf %119, %120 : vector<8x128xf32>
    %122 = arith.mulf %113, %86 : vector<8x128xf32>
    %123 = arith.mulf %107, %115 : vector<8x128xf32>
    %124 = arith.addf %122, %123 : vector<8x128xf32>
    %125 = math.tanh %124 : vector<8x128xf32>
    %126 = arith.mulf %121, %125 : vector<8x128xf32>
    %127 = arith.addi %15, %c2_i32 : i32
    %128 = vector.broadcast %127 : i32 to vector<8x1xi32>
    %129 = arith.cmpi eq, %13, %128 : vector<8x1xi32>
    %130 = vector.shape_cast %129 : vector<8x1xi1> to vector<8x1xi1>
    %131 = vector.broadcast %130 : vector<8x1xi1> to vector<8x128xi1>
    %132 = arith.select %131, %126, %94 : vector<8x128xi1>, vector<8x128xf32>
    %c3_i32 = arith.constant 3 : i32
    %c8_i32_39 = arith.constant 8 : i32
    %133 = arith.muli %c3_i32, %c8_i32_39 : i32
    %134 = tpu.assume_multiple %133, 8 : i32
    %135 = arith.index_cast %134 : i32 to index
    %c0_40 = arith.constant 0 : index
    %136 = vector.load %arg13[%135, %c0_40] : memref<64x512xf32, #tpu.memory_space<vmem>>, vector<8x512xf32>
    %137 = arith.truncf %126 : vector<8x128xf32> to vector<8x128xbf16>
    %cst_41 = arith.constant dense<0.000000e+00> : vector<8x512xf32>
    %138 = tpu.matmul %137, %14, %cst_41 {dimension_numbers = #tpu.dot_dimension_numbers<[1], [0], [0], [1], [0, 0, 1, 1], [], []>} : vector<8x128xbf16>, vector<128x512xbf16>, vector<8x512xf32> -> vector<8x512xf32>
    %139 = arith.addf %136, %138 : vector<8x512xf32>
    %140 = vector.extract_strided_slice %139 {offsets = [0, 0], sizes = [8, 128], strides = [1, 1]} : vector<8x512xf32> to vector<8x128xf32>
    %141 = arith.negf %140 : vector<8x128xf32>
    %142 = math.exp %141 : vector<8x128xf32>
    %cst_42 = arith.constant 1.000000e+00 : f32
    %143 = vector.broadcast %cst_42 : f32 to vector<8x128xf32>
    %144 = arith.addf %143, %142 : vector<8x128xf32>
    %145 = arith.divf %143, %144 : vector<8x128xf32>
    %146 = vector.extract_strided_slice %139 {offsets = [0, 128], sizes = [8, 128], strides = [1, 1]} : vector<8x512xf32> to vector<8x128xf32>
    %147 = arith.negf %146 : vector<8x128xf32>
    %148 = math.exp %147 : vector<8x128xf32>
    %cst_43 = arith.constant 1.000000e+00 : f32
    %149 = vector.broadcast %cst_43 : f32 to vector<8x128xf32>
    %150 = arith.addf %149, %148 : vector<8x128xf32>
    %151 = arith.divf %149, %150 : vector<8x128xf32>
    %152 = vector.extract_strided_slice %139 {offsets = [0, 256], sizes = [8, 128], strides = [1, 1]} : vector<8x512xf32> to vector<8x128xf32>
    %153 = math.tanh %152 : vector<8x128xf32>
    %154 = vector.extract_strided_slice %139 {offsets = [0, 384], sizes = [8, 128], strides = [1, 1]} : vector<8x512xf32> to vector<8x128xf32>
    %155 = arith.negf %154 : vector<8x128xf32>
    %156 = math.exp %155 : vector<8x128xf32>
    %cst_44 = arith.constant 1.000000e+00 : f32
    %157 = vector.broadcast %cst_44 : f32 to vector<8x128xf32>
    %158 = arith.addf %157, %156 : vector<8x128xf32>
    %159 = arith.divf %157, %158 : vector<8x128xf32>
    %160 = arith.mulf %151, %124 : vector<8x128xf32>
    %161 = arith.mulf %145, %153 : vector<8x128xf32>
    %162 = arith.addf %160, %161 : vector<8x128xf32>
    %163 = math.tanh %162 : vector<8x128xf32>
    %164 = arith.mulf %159, %163 : vector<8x128xf32>
    %165 = arith.addi %15, %c3_i32 : i32
    %166 = vector.broadcast %165 : i32 to vector<8x1xi32>
    %167 = arith.cmpi eq, %13, %166 : vector<8x1xi32>
    %168 = vector.shape_cast %167 : vector<8x1xi1> to vector<8x1xi1>
    %169 = vector.broadcast %168 : vector<8x1xi1> to vector<8x128xi1>
    %170 = arith.select %169, %164, %132 : vector<8x128xi1>, vector<8x128xf32>
    %c4_i32 = arith.constant 4 : i32
    %c8_i32_45 = arith.constant 8 : i32
    %171 = arith.muli %c4_i32, %c8_i32_45 : i32
    %172 = tpu.assume_multiple %171, 8 : i32
    %173 = arith.index_cast %172 : i32 to index
    %c0_46 = arith.constant 0 : index
    %174 = vector.load %arg13[%173, %c0_46] : memref<64x512xf32, #tpu.memory_space<vmem>>, vector<8x512xf32>
    %175 = arith.truncf %164 : vector<8x128xf32> to vector<8x128xbf16>
    %cst_47 = arith.constant dense<0.000000e+00> : vector<8x512xf32>
    %176 = tpu.matmul %175, %14, %cst_47 {dimension_numbers = #tpu.dot_dimension_numbers<[1], [0], [0], [1], [0, 0, 1, 1], [], []>} : vector<8x128xbf16>, vector<128x512xbf16>, vector<8x512xf32> -> vector<8x512xf32>
    %177 = arith.addf %174, %176 : vector<8x512xf32>
    %178 = vector.extract_strided_slice %177 {offsets = [0, 0], sizes = [8, 128], strides = [1, 1]} : vector<8x512xf32> to vector<8x128xf32>
    %179 = arith.negf %178 : vector<8x128xf32>
    %180 = math.exp %179 : vector<8x128xf32>
    %cst_48 = arith.constant 1.000000e+00 : f32
    %181 = vector.broadcast %cst_48 : f32 to vector<8x128xf32>
    %182 = arith.addf %181, %180 : vector<8x128xf32>
    %183 = arith.divf %181, %182 : vector<8x128xf32>
    %184 = vector.extract_strided_slice %177 {offsets = [0, 128], sizes = [8, 128], strides = [1, 1]} : vector<8x512xf32> to vector<8x128xf32>
    %185 = arith.negf %184 : vector<8x128xf32>
    %186 = math.exp %185 : vector<8x128xf32>
    %cst_49 = arith.constant 1.000000e+00 : f32
    %187 = vector.broadcast %cst_49 : f32 to vector<8x128xf32>
    %188 = arith.addf %187, %186 : vector<8x128xf32>
    %189 = arith.divf %187, %188 : vector<8x128xf32>
    %190 = vector.extract_strided_slice %177 {offsets = [0, 256], sizes = [8, 128], strides = [1, 1]} : vector<8x512xf32> to vector<8x128xf32>
    %191 = math.tanh %190 : vector<8x128xf32>
    %192 = vector.extract_strided_slice %177 {offsets = [0, 384], sizes = [8, 128], strides = [1, 1]} : vector<8x512xf32> to vector<8x128xf32>
    %193 = arith.negf %192 : vector<8x128xf32>
    %194 = math.exp %193 : vector<8x128xf32>
    %cst_50 = arith.constant 1.000000e+00 : f32
    %195 = vector.broadcast %cst_50 : f32 to vector<8x128xf32>
    %196 = arith.addf %195, %194 : vector<8x128xf32>
    %197 = arith.divf %195, %196 : vector<8x128xf32>
    %198 = arith.mulf %189, %162 : vector<8x128xf32>
    %199 = arith.mulf %183, %191 : vector<8x128xf32>
    %200 = arith.addf %198, %199 : vector<8x128xf32>
    %201 = math.tanh %200 : vector<8x128xf32>
    %202 = arith.mulf %197, %201 : vector<8x128xf32>
    %203 = arith.addi %15, %c4_i32 : i32
    %204 = vector.broadcast %203 : i32 to vector<8x1xi32>
    %205 = arith.cmpi eq, %13, %204 : vector<8x1xi32>
    %206 = vector.shape_cast %205 : vector<8x1xi1> to vector<8x1xi1>
    %207 = vector.broadcast %206 : vector<8x1xi1> to vector<8x128xi1>
    %208 = arith.select %207, %202, %170 : vector<8x128xi1>, vector<8x128xf32>
    %c5_i32 = arith.constant 5 : i32
    %c8_i32_51 = arith.constant 8 : i32
    %209 = arith.muli %c5_i32, %c8_i32_51 : i32
    %210 = tpu.assume_multiple %209, 8 : i32
    %211 = arith.index_cast %210 : i32 to index
    %c0_52 = arith.constant 0 : index
    %212 = vector.load %arg13[%211, %c0_52] : memref<64x512xf32, #tpu.memory_space<vmem>>, vector<8x512xf32>
    %213 = arith.truncf %202 : vector<8x128xf32> to vector<8x128xbf16>
    %cst_53 = arith.constant dense<0.000000e+00> : vector<8x512xf32>
    %214 = tpu.matmul %213, %14, %cst_53 {dimension_numbers = #tpu.dot_dimension_numbers<[1], [0], [0], [1], [0, 0, 1, 1], [], []>} : vector<8x128xbf16>, vector<128x512xbf16>, vector<8x512xf32> -> vector<8x512xf32>
    %215 = arith.addf %212, %214 : vector<8x512xf32>
    %216 = vector.extract_strided_slice %215 {offsets = [0, 0], sizes = [8, 128], strides = [1, 1]} : vector<8x512xf32> to vector<8x128xf32>
    %217 = arith.negf %216 : vector<8x128xf32>
    %218 = math.exp %217 : vector<8x128xf32>
    %cst_54 = arith.constant 1.000000e+00 : f32
    %219 = vector.broadcast %cst_54 : f32 to vector<8x128xf32>
    %220 = arith.addf %219, %218 : vector<8x128xf32>
    %221 = arith.divf %219, %220 : vector<8x128xf32>
    %222 = vector.extract_strided_slice %215 {offsets = [0, 128], sizes = [8, 128], strides = [1, 1]} : vector<8x512xf32> to vector<8x128xf32>
    %223 = arith.negf %222 : vector<8x128xf32>
    %224 = math.exp %223 : vector<8x128xf32>
    %cst_55 = arith.constant 1.000000e+00 : f32
    %225 = vector.broadcast %cst_55 : f32 to vector<8x128xf32>
    %226 = arith.addf %225, %224 : vector<8x128xf32>
    %227 = arith.divf %225, %226 : vector<8x128xf32>
    %228 = vector.extract_strided_slice %215 {offsets = [0, 256], sizes = [8, 128], strides = [1, 1]} : vector<8x512xf32> to vector<8x128xf32>
    %229 = math.tanh %228 : vector<8x128xf32>
    %230 = vector.extract_strided_slice %215 {offsets = [0, 384], sizes = [8, 128], strides = [1, 1]} : vector<8x512xf32> to vector<8x128xf32>
    %231 = arith.negf %230 : vector<8x128xf32>
    %232 = math.exp %231 : vector<8x128xf32>
    %cst_56 = arith.constant 1.000000e+00 : f32
    %233 = vector.broadcast %cst_56 : f32 to vector<8x128xf32>
    %234 = arith.addf %233, %232 : vector<8x128xf32>
    %235 = arith.divf %233, %234 : vector<8x128xf32>
    %236 = arith.mulf %227, %200 : vector<8x128xf32>
    %237 = arith.mulf %221, %229 : vector<8x128xf32>
    %238 = arith.addf %236, %237 : vector<8x128xf32>
    %239 = math.tanh %238 : vector<8x128xf32>
    %240 = arith.mulf %235, %239 : vector<8x128xf32>
    %241 = arith.addi %15, %c5_i32 : i32
    %242 = vector.broadcast %241 : i32 to vector<8x1xi32>
    %243 = arith.cmpi eq, %13, %242 : vector<8x1xi32>
    %244 = vector.shape_cast %243 : vector<8x1xi1> to vector<8x1xi1>
    %245 = vector.broadcast %244 : vector<8x1xi1> to vector<8x128xi1>
    %246 = arith.select %245, %240, %208 : vector<8x128xi1>, vector<8x128xf32>
    %c6_i32 = arith.constant 6 : i32
    %c8_i32_57 = arith.constant 8 : i32
    %247 = arith.muli %c6_i32, %c8_i32_57 : i32
    %248 = tpu.assume_multiple %247, 8 : i32
    %249 = arith.index_cast %248 : i32 to index
    %c0_58 = arith.constant 0 : index
    %250 = vector.load %arg13[%249, %c0_58] : memref<64x512xf32, #tpu.memory_space<vmem>>, vector<8x512xf32>
    %251 = arith.truncf %240 : vector<8x128xf32> to vector<8x128xbf16>
    %cst_59 = arith.constant dense<0.000000e+00> : vector<8x512xf32>
    %252 = tpu.matmul %251, %14, %cst_59 {dimension_numbers = #tpu.dot_dimension_numbers<[1], [0], [0], [1], [0, 0, 1, 1], [], []>} : vector<8x128xbf16>, vector<128x512xbf16>, vector<8x512xf32> -> vector<8x512xf32>
    %253 = arith.addf %250, %252 : vector<8x512xf32>
    %254 = vector.extract_strided_slice %253 {offsets = [0, 0], sizes = [8, 128], strides = [1, 1]} : vector<8x512xf32> to vector<8x128xf32>
    %255 = arith.negf %254 : vector<8x128xf32>
    %256 = math.exp %255 : vector<8x128xf32>
    %cst_60 = arith.constant 1.000000e+00 : f32
    %257 = vector.broadcast %cst_60 : f32 to vector<8x128xf32>
    %258 = arith.addf %257, %256 : vector<8x128xf32>
    %259 = arith.divf %257, %258 : vector<8x128xf32>
    %260 = vector.extract_strided_slice %253 {offsets = [0, 128], sizes = [8, 128], strides = [1, 1]} : vector<8x512xf32> to vector<8x128xf32>
    %261 = arith.negf %260 : vector<8x128xf32>
    %262 = math.exp %261 : vector<8x128xf32>
    %cst_61 = arith.constant 1.000000e+00 : f32
    %263 = vector.broadcast %cst_61 : f32 to vector<8x128xf32>
    %264 = arith.addf %263, %262 : vector<8x128xf32>
    %265 = arith.divf %263, %264 : vector<8x128xf32>
    %266 = vector.extract_strided_slice %253 {offsets = [0, 256], sizes = [8, 128], strides = [1, 1]} : vector<8x512xf32> to vector<8x128xf32>
    %267 = math.tanh %266 : vector<8x128xf32>
    %268 = vector.extract_strided_slice %253 {offsets = [0, 384], sizes = [8, 128], strides = [1, 1]} : vector<8x512xf32> to vector<8x128xf32>
    %269 = arith.negf %268 : vector<8x128xf32>
    %270 = math.exp %269 : vector<8x128xf32>
    %cst_62 = arith.constant 1.000000e+00 : f32
    %271 = vector.broadcast %cst_62 : f32 to vector<8x128xf32>
    %272 = arith.addf %271, %270 : vector<8x128xf32>
    %273 = arith.divf %271, %272 : vector<8x128xf32>
    %274 = arith.mulf %265, %238 : vector<8x128xf32>
    %275 = arith.mulf %259, %267 : vector<8x128xf32>
    %276 = arith.addf %274, %275 : vector<8x128xf32>
    %277 = math.tanh %276 : vector<8x128xf32>
    %278 = arith.mulf %273, %277 : vector<8x128xf32>
    %279 = arith.addi %15, %c6_i32 : i32
    %280 = vector.broadcast %279 : i32 to vector<8x1xi32>
    %281 = arith.cmpi eq, %13, %280 : vector<8x1xi32>
    %282 = vector.shape_cast %281 : vector<8x1xi1> to vector<8x1xi1>
    %283 = vector.broadcast %282 : vector<8x1xi1> to vector<8x128xi1>
    %284 = arith.select %283, %278, %246 : vector<8x128xi1>, vector<8x128xf32>
    %c7_i32 = arith.constant 7 : i32
    %c8_i32_63 = arith.constant 8 : i32
    %285 = arith.muli %c7_i32, %c8_i32_63 : i32
    %286 = tpu.assume_multiple %285, 8 : i32
    %287 = arith.index_cast %286 : i32 to index
    %c0_64 = arith.constant 0 : index
    %288 = vector.load %arg13[%287, %c0_64] : memref<64x512xf32, #tpu.memory_space<vmem>>, vector<8x512xf32>
    %289 = arith.truncf %278 : vector<8x128xf32> to vector<8x128xbf16>
    %cst_65 = arith.constant dense<0.000000e+00> : vector<8x512xf32>
    %290 = tpu.matmul %289, %14, %cst_65 {dimension_numbers = #tpu.dot_dimension_numbers<[1], [0], [0], [1], [0, 0, 1, 1], [], []>} : vector<8x128xbf16>, vector<128x512xbf16>, vector<8x512xf32> -> vector<8x512xf32>
    %291 = arith.addf %288, %290 : vector<8x512xf32>
    %292 = vector.extract_strided_slice %291 {offsets = [0, 0], sizes = [8, 128], strides = [1, 1]} : vector<8x512xf32> to vector<8x128xf32>
    %293 = arith.negf %292 : vector<8x128xf32>
    %294 = math.exp %293 : vector<8x128xf32>
    %cst_66 = arith.constant 1.000000e+00 : f32
    %295 = vector.broadcast %cst_66 : f32 to vector<8x128xf32>
    %296 = arith.addf %295, %294 : vector<8x128xf32>
    %297 = arith.divf %295, %296 : vector<8x128xf32>
    %298 = vector.extract_strided_slice %291 {offsets = [0, 128], sizes = [8, 128], strides = [1, 1]} : vector<8x512xf32> to vector<8x128xf32>
    %299 = arith.negf %298 : vector<8x128xf32>
    %300 = math.exp %299 : vector<8x128xf32>
    %cst_67 = arith.constant 1.000000e+00 : f32
    %301 = vector.broadcast %cst_67 : f32 to vector<8x128xf32>
    %302 = arith.addf %301, %300 : vector<8x128xf32>
    %303 = arith.divf %301, %302 : vector<8x128xf32>
    %304 = vector.extract_strided_slice %291 {offsets = [0, 256], sizes = [8, 128], strides = [1, 1]} : vector<8x512xf32> to vector<8x128xf32>
    %305 = math.tanh %304 : vector<8x128xf32>
    %306 = vector.extract_strided_slice %291 {offsets = [0, 384], sizes = [8, 128], strides = [1, 1]} : vector<8x512xf32> to vector<8x128xf32>
    %307 = arith.negf %306 : vector<8x128xf32>
    %308 = math.exp %307 : vector<8x128xf32>
    %cst_68 = arith.constant 1.000000e+00 : f32
    %309 = vector.broadcast %cst_68 : f32 to vector<8x128xf32>
    %310 = arith.addf %309, %308 : vector<8x128xf32>
    %311 = arith.divf %309, %310 : vector<8x128xf32>
    %312 = arith.mulf %303, %276 : vector<8x128xf32>
    %313 = arith.mulf %297, %305 : vector<8x128xf32>
    %314 = arith.addf %312, %313 : vector<8x128xf32>
    %315 = math.tanh %314 : vector<8x128xf32>
    %316 = arith.mulf %311, %315 : vector<8x128xf32>
    %317 = arith.addi %15, %c7_i32 : i32
    %318 = vector.broadcast %317 : i32 to vector<8x1xi32>
    %319 = arith.cmpi eq, %13, %318 : vector<8x1xi32>
    %320 = vector.shape_cast %319 : vector<8x1xi1> to vector<8x1xi1>
    %321 = vector.broadcast %320 : vector<8x1xi1> to vector<8x128xi1>
    %322 = arith.select %321, %316, %284 : vector<8x128xi1>, vector<8x128xf32>
    %c8_i32_69 = arith.constant 8 : i32
    %c0_70 = arith.constant 0 : index
    %c0_71 = arith.constant 0 : index
    %323 = vector.load %arg10[%c0_70, %c0_71] : memref<8x128xf32, #tpu.memory_space<vmem>>, vector<8x128xf32>
    tpu.vector_store %arg10[%c0_70, %c0_71], %316 {strides = array<i32>} : memref<8x128xf32, #tpu.memory_space<vmem>>, vector<8x128xf32>,
    %c0_72 = arith.constant 0 : index
    %c0_73 = arith.constant 0 : index
    %324 = vector.load %arg11[%c0_72, %c0_73] : memref<8x128xf32, #tpu.memory_space<vmem>>, vector<8x128xf32>
    tpu.vector_store %arg11[%c0_72, %c0_73], %314 {strides = array<i32>} : memref<8x128xf32, #tpu.memory_space<vmem>>, vector<8x128xf32>,
    %c0_74 = arith.constant 0 : index
    %c0_75 = arith.constant 0 : index
    %325 = vector.load %arg12[%c0_74, %c0_75] : memref<8x128xf32, #tpu.memory_space<vmem>>, vector<8x128xf32>
    tpu.vector_store %arg12[%c0_74, %c0_75], %322 {strides = array<i32>} : memref<8x128xf32, #tpu.memory_space<vmem>>, vector<8x128xf32>,
    %c0_i32_76 = arith.constant 0 : i32
    %326 = arith.cmpi eq, %arg1, %c0_i32_76 : i32
    %327 = arith.extui %326 : i1 to i32
    %c0_i32_77 = arith.constant 0 : i32
    %328 = arith.cmpi ne, %327, %c0_i32_77 : i32
    scf.if %328 {
      %329 = arith.truncf %322 : vector<8x128xf32> to vector<8x128xbf16>
      %c0_78 = arith.constant 0 : index
      %c0_79 = arith.constant 0 : index
      %330 = vector.load %arg7[%c0_78, %c0_79] : memref<128x128xbf16, #tpu.memory_space<vmem>>, vector<128x128xbf16>
      %cst_80 = arith.constant dense<0.000000e+00> : vector<8x128xf32>
      %331 = tpu.matmul %329, %330, %cst_80 {dimension_numbers = #tpu.dot_dimension_numbers<[1], [0], [0], [1], [0, 0, 1, 1], [], []>} : vector<8x128xbf16>, vector<128x128xbf16>, vector<8x128xf32> -> vector<8x128xf32>
      %c0_81 = arith.constant 0 : index
      %c0_82 = arith.constant 0 : index
      %332 = vector.load %arg8[%c0_81, %c0_82] : memref<1x128xf32, #tpu.memory_space<vmem>>, vector<1x128xf32>
      %333 = vector.broadcast %332 : vector<1x128xf32> to vector<8x128xf32>
      %334 = arith.addf %331, %333 : vector<8x128xf32>
      %c0_83 = arith.constant 0 : index
      %c0_84 = arith.constant 0 : index
      %335 = vector.load %arg9[%c0_83, %c0_84] : memref<8x128xf32, #tpu.memory_space<vmem>>, vector<8x128xf32>
      tpu.vector_store %arg9[%c0_83, %c0_84], %334 {strides = array<i32>} : memref<8x128xf32, #tpu.memory_space<vmem>>, vector<8x128xf32>,
    } else {
    }
    return
  }
  func.func @transform_0(%arg0: i32, %arg1: i32) -> (i32, i32) {
    %c0_i32 = arith.constant 0 : i32
    %c0_i32_0 = arith.constant 0 : i32
    return %arg0, %c0_i32 : i32, i32
  }
  func.func @transform_1(%arg0: i32, %arg1: i32) -> (i32, i32, i32) {
    %c0_i32 = arith.constant 0 : i32
    %c0_i32_0 = arith.constant 0 : i32
    return %arg0, %arg1, %c0_i32 : i32, i32, i32
  }
  func.func @transform_2(%arg0: i32, %arg1: i32) -> (i32, i32) {
    %c0_i32 = arith.constant 0 : i32
    %c0_i32_0 = arith.constant 0 : i32
    %c0_i32_1 = arith.constant 0 : i32
    return %c0_i32, %c0_i32_0 : i32, i32
  }
  func.func @transform_3(%arg0: i32, %arg1: i32) -> (i32, i32) {
    %c0_i32 = arith.constant 0 : i32
    %c0_i32_0 = arith.constant 0 : i32
    %c0_i32_1 = arith.constant 0 : i32
    return %c0_i32, %c0_i32_0 : i32, i32
  }
  func.func @transform_4(%arg0: i32, %arg1: i32) -> (i32, i32) {
    %c0_i32 = arith.constant 0 : i32
    %c0_i32_0 = arith.constant 0 : i32
    %c0_i32_1 = arith.constant 0 : i32
    return %c0_i32, %c0_i32_0 : i32, i32
  }
  func.func @transform_5(%arg0: i32, %arg1: i32) -> (i32, i32) {
    %c0_i32 = arith.constant 0 : i32
    %c0_i32_0 = arith.constant 0 : i32
    %c0_i32_1 = arith.constant 0 : i32
    return %c0_i32, %c0_i32_0 : i32, i32
  }
  func.func @transform_6(%arg0: i32, %arg1: i32) -> (i32, i32) {
    %c0_i32 = arith.constant 0 : i32
    %c0_i32_0 = arith.constant 0 : i32
    %c0_i32_1 = arith.constant 0 : i32
    return %c0_i32, %c0_i32_0 : i32, i32
  }
  func.func @transform_7(%arg0: i32, %arg1: i32) -> (i32, i32) {
    %c0_i32 = arith.constant 0 : i32
    %c0_i32_0 = arith.constant 0 : i32
    return %arg0, %c0_i32 : i32, i32
  }
}

</mosaic_0001>

<bundles_post_ra>
// kernel: tpu_custom_call.1
= control target key start
LH: loop header
LB: loop body
LE: loop exit
PB: predicated region body
PF: predicated region fallthrough
CT: control target
= control target key end

     0   :  { %12 = vsyncpa [#allocation7], 0  ;;  %s2795_s0 = inlined_call_operand.vmem [shape: s32[8,1], index: 0, kind: input, shape index: {}]   ;;  %s2796_s1 = inlined_call_operand.vmem [shape: bf16[1,64,16], index: 1, kind: input, shape index: {}]   ;;  %s2797_s2 = inlined_call_operand.vmem [shape: bf16[16,512], index: 2, kind: input, shape index: {}]   ;;  %s2798_s3 = inlined_call_operand.hbm [shape: bf16[128,512], index: 3, kind: input, shape index: {}]   ;;  %s2799_s4 = inlined_call_operand.vmem [shape: f32[1,512], index: 4, kind: input, shape index: {}]   ;;  %s2800_s5 = inlined_call_operand.hbm [shape: bf16[128,128], index: 5, kind: input, shape index: {}]   ;;  %s2801_s6 = inlined_call_operand.vmem [shape: f32[1,128], index: 6, kind: input, shape index: {}]   ;;  %s2802_s7 = inlined_call_operand.hbm [shape: f32[8,128], index: 7, kind: output, shape index: {}]  }
   0x1   :  { %13 = vsyncpa [#allocation10], 0 }
   0x2   :  { %14 = vsyncpa [#allocation8], 0  ;;  %s2099_s24 = smov [#allocation6]  }
   0x3   :  { %s26_s25 = sshll.u32 %s2099_s24, 4  ;;  %s27_s25 = int_to_ptr.vmem [resolvable:$true] %s26_s25 }
   0x4   :  { %s2041_s26 = scalar_lea.vmem %s27_s25, 4096  ;;  %p2046_p1 = scmp.lt.s32.totalorder %s27_s25, %s27_s25 }
   0x5   :  { %p2042_p0 = scmp.ne.s32.totalorder %s27_s25, %s2041_s26  ;;  %p2047_p2 = scmp.lt.s32.totalorder %s2041_s26, %s2041_s26 }
   0x7   :  { %p2048_p3 = por %p2047_p2, %p2046_p1 }
   0x9   :  { %p2049_p4 = pnand %p2048_p3, %p2042_p0 }
   0xb   :  { %2052 = shalt.err (!%p2049_p4)
}
   0xc   :  { %s2100_s27 = smov 256   ;;  %s2101_s28 = smov 16  }
   0xd   :  { %32 = dma.hbm_to_vmem [thread:$0]  %s2798_s3, 4096, %s27_s25, [#allocation7], %s2100_s27, %s2100_s27, %s2101_s28  }
   0xe   :  { %s2102_s8 = smov [#allocation9]  }
   0xf   :  { %s40_s9 = sshll.u32 %s2102_s8, 4  ;;  %s41_s9 = int_to_ptr.vmem [resolvable:$true] %s40_s9 }
  0x10   :  { %s2061_s10 = scalar_lea.vmem %s41_s9, 1024  ;;  %p2066_p6 = scmp.lt.s32.totalorder %s41_s9, %s41_s9 }
  0x11   :  { %p2062_p5 = scmp.ne.s32.totalorder %s41_s9, %s2061_s10  ;;  %p2067_p7 = scmp.lt.s32.totalorder %s2061_s10, %s2061_s10 }
  0x13   :  { %p2068_p8 = por %p2067_p7, %p2066_p6 }
  0x15   :  { %p2069_p9 = pnand %p2068_p8, %p2062_p5 }
  0x17   :  { %2072 = shalt.err (!%p2069_p9)
}
  0x18   :  { %s2103_s11 = smov 64   ;;  %s2104_s12 = smov 4  }
  0x19   :  { %46 = dma.hbm_to_vmem [thread:$0]  %s2800_s5, 1024, %s41_s9, [#allocation10], %s2103_s11, %s2103_s11, %s2104_s12  }
  0x1a   :  { %2093 = dma.done.wait [#allocation7], 4096  }
  0x1b   :  { %2094 = vsyncadd [#allocation7], 4294963200 }
  0x1c   :  { %2095 = dma.done.wait [#allocation10], 1024  }
  0x1d   :  { %2096 = vsyncadd [#allocation10], 4294966272  ;;  %v2803_v0 = vmov 0   ;;  %v1807_v1 = vld [vmem:[%s2797_s2 + $0x4] ss:$16 sps:$4 sm:$0xff]   ;;  %vm137_vm0 = vcmask 130048   ;;  %v77_v46 = vlaneseq }
  0x1e   :  { %182 = vmatprep.mubr.bf16.mxu0 %v2803_v0  ;;  %255 = vmatprep.mubr.bf16.mxu1 %v2803_v0  ;;  %v1809_v2 = vld [vmem:[%s2797_s2 + $0xc] ss:$16 sps:$4 sm:$0xff]   ;;  %v1811_v3 = vld [vmem:[%s2797_s2] ss:$16 sps:$4 sm:$0xff]   ;;  %v1812_v4 = vld [vmem:[%s2797_s2 + $0x8] ss:$16 sps:$4 sm:$0xff]  }
  0x1f   :  { %1805 = vset.pattern.permute.xlu0 %v2803_v0  ;;  %1806 = vset.pattern.permute.xlu1 %v2803_v0  ;;  %v1813_v5 = vld [vmem:[%s2796_s1] sm:$0xff]   ;;  %v2177_v7 = vld [vmem:[#allocation6 + $0xec] ss:$16 sps:$4 sm:$0xff]   ;;  %v2182_v9 = vld [vmem:[#allocation6 + $0xe8] ss:$16 sps:$4 sm:$0xff]   ;;  %v2106_v44 = vmov 0.0|0.0  }
  0x20   :  { %164 = vmatprep.subr.bf16.mxu0 %v1807_v1  ;;  %237 = vmatprep.subr.bf16.mxu1 %v1809_v2  ;;  %v2175_v6 = vld [vmem:[#allocation6 + $0xe4] ss:$16 sps:$4 sm:$0xff]   ;;  %v2179_v8 = vld [vmem:[#allocation6 + $0xe0] ss:$16 sps:$4 sm:$0xff]   ;;  %v2190_v11 = vld [vmem:[#allocation6 + $0xcc] ss:$16 sps:$4 sm:$0xff]  }
  0x21   :  { %165 = vmatpush1.bf16.msra.mxu0 %v1811_v3  ;;  %238 = vmatpush1.bf16.msra.mxu1 %v1812_v4  ;;  %v2186_v10 = vld [vmem:[#allocation6 + $0xc4] ss:$16 sps:$4 sm:$0xff]   ;;  %v2192_v12 = vld [vmem:[#allocation6 + $0xc0] ss:$16 sps:$4 sm:$0xff]   ;;  %v2194_v13 = vld [vmem:[#allocation6 + $0xc8] ss:$16 sps:$4 sm:$0xff]  }
  0x22   :  { %534 = vmatprep.subr.bf16.mxu0 %v2175_v6  ;;  %575 = vmatprep.subr.bf16.mxu1 %v2177_v7  ;;  %v1826_v14 = vld [vmem:[%s2796_s1 + $0x8] sm:$0xff]   ;;  %v2203_v15 = vld [vmem:[#allocation6 + $0xa4] ss:$16 sps:$4 sm:$0xff]   ;;  %v2209_v17 = vld [vmem:[#allocation6 + $0xa0] ss:$16 sps:$4 sm:$0xff]   ;;  %v78_v47 = vshrl.u32 %v77_v46, 7 }
  0x23   :  { %v2206_v16 = vld [vmem:[#allocation6 + $0xac] ss:$16 sps:$4 sm:$0xff]   ;;  %v2211_v18 = vld [vmem:[#allocation6 + $0xa8] ss:$16 sps:$4 sm:$0xff]   ;;  %v2215_v19 = vld [vmem:[#allocation6 + $0x84] ss:$16 sps:$4 sm:$0xff]  }
  0x24   :  { %1691 = vmatmul.mubr.msk.bf16.vlgmr.msra.gmra.mxu0 %vm137_vm0, %v1813_v5  ;;  %1695 = vmatmul.mubr.msk.bf16.vlgmr.msra.gmra.mxu1 %vm137_vm0, %v1813_v5  ;;  %v2218_v20 = vld [vmem:[#allocation6 + $0x8c] ss:$16 sps:$4 sm:$0xff]   ;;  %v2222_v21 = vld [vmem:[#allocation6 + $0x80] ss:$16 sps:$4 sm:$0xff]   ;;  %v2225_v22 = vld [vmem:[#allocation6 + $0x88] ss:$16 sps:$4 sm:$0xff]  }
  0x25   :  { %535 = vmatpush1.bf16.msra.mxu0 %v2179_v8  ;;  %576 = vmatpush1.bf16.msra.mxu1 %v2182_v9  ;;  %v2230_v23 = vld [vmem:[#allocation6 + $0x64] ss:$16 sps:$4 sm:$0xff]   ;;  %v2234_v24 = vld [vmem:[#allocation6 + $0x6c] ss:$16 sps:$4 sm:$0xff]   ;;  %v2240_v26 = vld [vmem:[#allocation6 + $0x60] ss:$16 sps:$4 sm:$0xff]  }
  0x26   :  { %536 = vmatprep.subr.bf16.mxu0 %v2186_v10  ;;  %577 = vmatprep.subr.bf16.mxu1 %v2190_v11  ;;  %v1839_v25 = vld [vmem:[%s2796_s1 + $0x10] sm:$0xff]   ;;  %v2244_v27 = vld [vmem:[#allocation6 + $0x68] ss:$16 sps:$4 sm:$0xff]   ;;  %v2249_v29 = vld [vmem:[#allocation6 + $0x4c] ss:$16 sps:$4 sm:$0xff]   ;;  %v87_v48 = vsub.s32 2, %v78_v47 }
  0x27   :  { %192 = vmatprep.mubr.bf16.mxu0 %v2803_v0  ;;  %265 = vmatprep.mubr.bf16.mxu1 %v2803_v0  ;;  %v2246_v28 = vld [vmem:[#allocation6 + $0x44] ss:$16 sps:$4 sm:$0xff]   ;;  %v2254_v30 = vld [vmem:[#allocation6 + $0x40] ss:$16 sps:$4 sm:$0xff]   ;;  %v2256_v31 = vld [vmem:[#allocation6 + $0x48] ss:$16 sps:$4 sm:$0xff]  }
  0x28   :  { %v1852_v32 = vld [vmem:[%s2796_s1 + $0x18] sm:$0xff]   ;;  %v2264_v33 = vld [vmem:[#allocation6 + $0x24] ss:$16 sps:$4 sm:$0xff]   ;;  %v2270_v35 = vld [vmem:[#allocation6 + $0x20] ss:$16 sps:$4 sm:$0xff]   ;;  %v79_v49 = vsub.s32 0, %v78_v47 }
  0x29   :  { %537 = vmatpush1.bf16.msra.mxu0 %v2192_v12  ;;  %578 = vmatpush1.bf16.msra.mxu1 %v2194_v13  ;;  %v2268_v34 = vld [vmem:[#allocation6 + $0x2c] ss:$16 sps:$4 sm:$0xff]   ;;  %v2272_v36 = vld [vmem:[#allocation6 + $0x28] ss:$16 sps:$4 sm:$0xff]   ;;  %v2274_v37 = vld [vmem:[#allocation6 + $0x4] ss:$16 sps:$4 sm:$0xff]  }
  0x2a   :  { %538 = vmatprep.subr.bf16.mxu0 %v2203_v15  ;;  %579 = vmatprep.subr.bf16.mxu1 %v2206_v16  ;;  %v2277_v38 = vld [vmem:[#allocation6 + $0xc] ss:$16 sps:$4 sm:$0xff]   ;;  %v328_v39 = vld [vmem:[%s2795_s0] sm:$0xff]  ;;  %v2291_v42 = vld [vmem:[#allocation6 + $0x8] ss:$16 sps:$4 sm:$0xff]   ;;  %v91_v50 = vsub.s32 3, %v78_v47 }
  0x2b   :  { %v2284_v40 = vadd.s32 4294967295, %v328_v39  ;;  %v2287_v41 = vld [vmem:[#allocation6] ss:$16 sps:$4 sm:$0xff]   ;;  %v83_v55 = vsub.s32 1, %v78_v47  ;;  %s2109_s8 = smov [#allocation11]  }
  0x2c   :  { %1692 = vmatmul.mubr.msk.bf16.gmra.mxu0 %vm137_vm0, %v1826_v14  ;;  %1696 = vmatmul.mubr.msk.bf16.gmra.mxu1 %vm137_vm0, %v1826_v14  ;;  %v75_v51 = vld [vmem:[%s2799_s4] sm:$0xf]  ;;  %s1666_s9 = sshll.u32 %s2109_s8, 4  ;;  %s1667_s9 = int_to_ptr.vmem [resolvable:$true] %s1666_s9 }
  0x2d   :  { %539 = vmatpush1.bf16.msra.mxu0 %v2209_v17  ;;  %202 = vmatprep.mubr.bf16.mxu0 %v2803_v0  ;;  %vm645_vm1 = vcmp.eq.s32.totalorder %v2284_v40, 0  ;;  %vm772_vm2 = vcmp.eq.s32.totalorder %v2284_v40, 1  ;;  %v2348_v54 = vrot.slane %v75_v51, %v87_v48  ;;  %v80_v58 = vrot.slane %v75_v51, %v79_v49  ;;  %s2073_s10 = scalar_lea.vmem %s1667_s9, 128  ;;  %p2078_p11 = scmp.lt.s32.totalorder %s1667_s9, %s1667_s9 }
  0x2e   :  { %580 = vmatpush1.bf16.msra.mxu1 %v2211_v18  ;;  %540 = vmatprep.subr.bf16.mxu0 %v2215_v19  ;;  %v646_v43 = vsel %vm645_vm1, 1, %v2803_v0  ;;  %v773_v45 = vsel %vm772_vm2, 1, %v2803_v0  ;;  %v2354_v59 = vrot.slane %v75_v51, %v91_v50  ;;  %v84_v62 = vrot.slane %v75_v51, %v83_v55  ;;  %p2074_p10 = scmp.ne.s32.totalorder %s1667_s9, %s2073_s10  ;;  %p2079_p12 = scmp.lt.s32.totalorder %s2073_s10, %s2073_s10 }
  0x2f   :  { %581 = vmatprep.subr.bf16.mxu1 %v2218_v20  ;;  %275 = vmatprep.mubr.bf16.mxu1 %v2803_v0  ;;  %vm899_vm3 = vcmp.eq.s32.totalorder %v2284_v40, 2  ;;  %vm1026_vm6 = vcmp.eq.s32.totalorder %v2284_v40, 3  ;;  %vm1153_vm8 = vcmp.eq.s32.totalorder %v2284_v40, 4  ;;  %vm1280_vm10 = vcmp.eq.s32.totalorder %v2284_v40, 5 }
  0x30   :  { %648 = vperm.xlu0 %1805, %v646_v43   ;;  %vm1407_vm12 = vcmp.eq.s32.totalorder %v2284_v40, 6  ;;  %vm1534_vm14 = vcmp.eq.s32.totalorder %v2284_v40, 7  ;;  %p2080_p13 = por %p2079_p12, %p2078_p11 }
  0x31   :  { %541 = vmatpush1.bf16.msra.mxu0 %v2222_v21 }
  0x32   :  { %582 = vmatpush1.bf16.msra.mxu1 %v2225_v22  ;;  %542 = vmatprep.subr.bf16.mxu0 %v2230_v23  ;;  %p2081_p0 = pnand %p2080_p13, %p2074_p10 }
  0x33   :  { %583 = vmatprep.subr.bf16.mxu1 %v2234_v24 }
  0x34   :  { %1693 = vmatmul.mubr.msk.bf16.gmra.mxu0 %vm137_vm0, %v1839_v25  ;;  %1697 = vmatmul.mubr.msk.bf16.gmra.mxu1 %vm137_vm0, %v1839_v25 }
  0x35   :  { %543 = vmatpush1.bf16.msra.mxu0 %v2240_v26  ;;  %212 = vmatprep.mubr.bf16.mxu0 %v2803_v0 }
  0x36   :  { %584 = vmatpush1.bf16.msra.mxu1 %v2244_v27  ;;  %544 = vmatprep.subr.bf16.mxu0 %v2246_v28 }
  0x37   :  { %585 = vmatprep.subr.bf16.mxu1 %v2249_v29  ;;  %285 = vmatprep.mubr.bf16.mxu1 %v2803_v0 }
  0x38   :  { %775 = vperm.xlu0 %1805, %v773_v45  }
  0x39   :  { %545 = vmatpush1.bf16.msra.mxu0 %v2254_v30 }
  0x3a   :  { %586 = vmatpush1.bf16.msra.mxu1 %v2256_v31  ;;  %546 = vmatprep.subr.bf16.mxu0 %v2264_v33 }
  0x3b   :  { %587 = vmatprep.subr.bf16.mxu1 %v2268_v34 }
  0x3c   :  { %1694 = vmatmul.mubr.msk.bf16.gmra.mxu0 %vm137_vm0, %v1852_v32  ;;  %1698 = vmatmul.mubr.msk.bf16.gmra.mxu1 %vm137_vm0, %v1852_v32  ;;  %vm2108_vm0 = vmmov 0  }
  0x3d   :  { %547 = vmatpush1.bf16.msra.mxu0 %v2270_v35  ;;  %566 = vmatprep.mubr.bf16.mxu0 %v2803_v0 }
  0x3e   :  { %588 = vmatpush1.bf16.msra.mxu1 %v2272_v36  ;;  %548 = vmatprep.subr.bf16.mxu0 %v2274_v37 }
  0x3f   :  { %589 = vmatprep.subr.bf16.mxu1 %v2277_v38  ;;  %607 = vmatprep.mubr.bf16.mxu1 %v2803_v0 }
  0x41   :  { %549 = vmatpush1.bf16.msra.mxu0 %v2287_v41 }
  0x42   :  { %590 = vmatpush1.bf16.msra.mxu1 %v2291_v42  ;;  %660 = vmatprep.subr.bf16.mxu0 %v2175_v6 }
  0x43   :  { %701 = vmatprep.subr.bf16.mxu1 %v2177_v7 }
  0x44   :  { %567 = vmatmul.mubr.bf16.vlgmr.msra.gmra.mxu0 %v2106_v44 }
  0x45   :  { %608 = vmatmul.mubr.bf16.vlgmr.msra.gmra.mxu1 %v2106_v44  ;;  %661 = vmatpush1.bf16.msra.mxu0 %v2179_v8 }
  0x46   :  { %702 = vmatpush1.bf16.msra.mxu1 %v2182_v9  ;;  %662 = vmatprep.subr.bf16.mxu0 %v2186_v10 }
  0x47   :  { %703 = vmatprep.subr.bf16.mxu1 %v2190_v11  ;;  %692 = vmatprep.mubr.bf16.mxu0 %v2803_v0 }
  0x48   :  { %733 = vmatprep.mubr.bf16.mxu1 %v2803_v0 }
  0x49   :  { %663 = vmatpush1.bf16.msra.mxu0 %v2192_v12 }
  0x4a   :  { %704 = vmatpush1.bf16.msra.mxu1 %v2194_v13  ;;  %664 = vmatprep.subr.bf16.mxu0 %v2203_v15 }
  0x4b   :  { %705 = vmatprep.subr.bf16.mxu1 %v2206_v16 }
  0x4d   :  { %665 = vmatpush1.bf16.msra.mxu0 %v2209_v17 }
  0x4e   :  { %706 = vmatpush1.bf16.msra.mxu1 %v2211_v18  ;;  %666 = vmatprep.subr.bf16.mxu0 %v2215_v19 }
  0x4f   :  { %707 = vmatprep.subr.bf16.mxu1 %v2218_v20 }
  0x51   :  { %667 = vmatpush1.bf16.msra.mxu0 %v2222_v21 }
  0x52   :  { %708 = vmatpush1.bf16.msra.mxu1 %v2225_v22  ;;  %668 = vmatprep.subr.bf16.mxu0 %v2230_v23 }
  0x53   :  { %709 = vmatprep.subr.bf16.mxu1 %v2234_v24 }
  0x55   :  { %669 = vmatpush1.bf16.msra.mxu0 %v2240_v26 }
  0x56   :  { %710 = vmatpush1.bf16.msra.mxu1 %v2244_v27  ;;  %670 = vmatprep.subr.bf16.mxu0 %v2246_v28 }
  0x57   :  { %711 = vmatprep.subr.bf16.mxu1 %v2249_v29 }
  0x59   :  { %671 = vmatpush1.bf16.msra.mxu0 %v2254_v30 }
  0x5a   :  { %712 = vmatpush1.bf16.msra.mxu1 %v2256_v31  ;;  %672 = vmatprep.subr.bf16.mxu0 %v2264_v33 }
  0x5b   :  { %713 = vmatprep.subr.bf16.mxu1 %v2268_v34 }
  0x5d   :  { %673 = vmatpush1.bf16.msra.mxu0 %v2270_v35 }
  0x5e   :  { %714 = vmatpush1.bf16.msra.mxu1 %v2272_v36  ;;  %674 = vmatprep.subr.bf16.mxu0 %v2274_v37 }
  0x5f   :  { %715 = vmatprep.subr.bf16.mxu1 %v2277_v38 }
  0x61   :  { %675 = vmatpush1.bf16.msra.mxu0 %v2287_v41 }
  0x62   :  { %716 = vmatpush1.bf16.msra.mxu1 %v2291_v42  ;;  %787 = vmatprep.subr.bf16.mxu0 %v2175_v6 }
  0x63   :  { %828 = vmatprep.subr.bf16.mxu1 %v2177_v7 }
  0xe4   :  { %v2344_v52 = vpop.f32.mrf.mxu0  ;;  %v2346_v53 = vpop.f32.mrf.mxu1 }
  0xe6   :  { %v2350_v56 = vpop.f32.mrf.mxu0  ;;  %v2352_v57 = vpop.f32.mrf.mxu1 }
  0xe8   :  { %v188_v60 = vpop.f32.mrf.mxu0  ;;  %v261_v61 = vpop.f32.mrf.mxu1 }
  0xe9   :  { %v2356_v63 = vadd.f32 %v188_v60, %v80_v58  ;;  %v2359_v1 = vadd.f32 %v261_v61, %v2348_v54 }
  0xea   :  { %v190_v2 = vpop.f32.mrf.mxu0  ;;  %v263_v3 = vpop.f32.mrf.mxu1 }
  0xeb   :  { %v2361_v4 = vadd.f32 %v190_v2, %v84_v62  ;;  %v2364_v5 = vadd.f32 %v263_v3, %v2354_v59 }
  0xec   :  { %v194_v14 = vpop.f32.mrf.mxu0  ;;  %v267_v25 = vpop.f32.mrf.mxu1 }
  0xed   :  { %v2366_v32 = vadd.f32 %v194_v14, %v80_v58  ;;  %v2369_v39 = vadd.f32 %v267_v25, %v2348_v54 }
  0xee   :  { %v196_v43 = vpop.f32.mrf.mxu0  ;;  %v269_v44 = vpop.f32.mrf.mxu1 }
  0xef   :  { %2805 = vst [vmem:[#allocation15_spill] sm:$0xff] %v2369_v39  ;;  %v2371_v45 = vadd.f32 %v196_v43, %v84_v62  ;;  %v2374_v46 = vadd.f32 %v269_v44, %v2354_v59 }
  0xf0   :  { %v198_v47 = vpop.f32.mrf.mxu0  ;;  %v271_v48 = vpop.f32.mrf.mxu1 }
  0xf1   :  { %2806 = vst [vmem:[#allocation16_spill] sm:$0xff] %v2374_v46  ;;  %v2376_v49 = vadd.f32 %v198_v47, %v80_v58  ;;  %v2379_v50 = vadd.f32 %v271_v48, %v2348_v54 }
  0xf2   :  { %v200_v51 = vpop.f32.mrf.mxu0  ;;  %v273_v55 = vpop.f32.mrf.mxu1 }
  0xf3   :  { %2807 = vst [vmem:[#allocation17_spill] sm:$0xff] %v2376_v49  ;;  %2808 = vst [vmem:[#allocation18_spill] sm:$0xff] %v2379_v50  ;;  %v2381_v60 = vadd.f32 %v200_v51, %v84_v62  ;;  %v2384_v61 = vadd.f32 %v273_v55, %v2354_v59 }
  0xf4   :  { %v204_v2 = vpop.f32.mrf.mxu0  ;;  %v277_v3 = vpop.f32.mrf.mxu1 }
  0xf5   :  { %2809 = vst [vmem:[#allocation19_spill] sm:$0xff] %v2381_v60  ;;  %2810 = vst [vmem:[#allocation20_spill] sm:$0xff] %v2384_v61  ;;  %v2386_v14 = vadd.f32 %v204_v2, %v80_v58  ;;  %v2389_v25 = vadd.f32 %v277_v3, %v2348_v54 }
  0xf6   :  { %v206_v43 = vpop.f32.mrf.mxu0  ;;  %v279_v44 = vpop.f32.mrf.mxu1 }
  0xf7   :  { %2811 = vst [vmem:[#allocation21_spill] sm:$0xff] %v2386_v14  ;;  %2812 = vst [vmem:[#allocation22_spill] sm:$0xff] %v2389_v25  ;;  %v2391_v47 = vadd.f32 %v206_v43, %v84_v62  ;;  %v2394_v48 = vadd.f32 %v279_v44, %v2354_v59 }
  0xf8   :  { %v208_v0 = vpop.f32.mrf.mxu0  ;;  %v281_v51 = vpop.f32.mrf.mxu1 }
  0xf9   :  { %2813 = vst [vmem:[#allocation23_spill] sm:$0xff] %v2391_v47  ;;  %2814 = vst [vmem:[#allocation24_spill] sm:$0xff] %v2394_v48  ;;  %v2396_v50 = vadd.f32 %v208_v0, %v80_v58  ;;  %v2399_v55 = vadd.f32 %v281_v51, %v2348_v54 }
  0xfa   :  { %v210_v61 = vpop.f32.mrf.mxu0  ;;  %v283_v2 = vpop.f32.mrf.mxu1 }
  0xfb   :  { %2815 = vst [vmem:[#allocation25_spill] sm:$0xff] %v2396_v50  ;;  %2816 = vst [vmem:[#allocation26_spill] sm:$0xff] %v2399_v55  ;;  %v2401_v14 = vadd.f32 %v210_v61, %v84_v62  ;;  %v2404_v3 = vadd.f32 %v283_v2, %v2354_v59 }
  0xfc   :  { %v214_v25 = vpop.f32.mrf.mxu0  ;;  %v287_v43 = vpop.f32.mrf.mxu1 }
  0xfd   :  { %2817 = vst [vmem:[#allocation27_spill] sm:$0xff] %v2401_v14  ;;  %2818 = vst [vmem:[#allocation28_spill] sm:$0xff] %v2404_v3  ;;  %v2406_v47 = vadd.f32 %v214_v25, %v80_v58  ;;  %v2409_v44 = vadd.f32 %v287_v43, %v2348_v54 }
  0xfe   :  { %v216_v48 = vpop.f32.mrf.mxu0  ;;  %v289_v0 = vpop.f32.mrf.mxu1 }
  0xff   :  { %2819 = vst [vmem:[#allocation29_spill] sm:$0xff] %v2406_v47  ;;  %2820 = vst [vmem:[#allocation30_spill] sm:$0xff] %v2409_v44  ;;  %v2411_v50 = vadd.f32 %v216_v48, %v84_v62  ;;  %v2414_v51 = vadd.f32 %v289_v0, %v2354_v59  ;;  %v185_v47 = vadd.f32 %v2344_v52, %v80_v58 }
 0x100   :  { %v218_v55 = vpop.f32.mrf.mxu0  ;;  %v291_v61 = vpop.f32.mrf.mxu1  ;;  %v187_v0 = vadd.f32 %v2350_v56, %v84_v62  ;;  %v258_v56 = vadd.f32 %v2346_v53, %v2348_v54 }
 0x101   :  { %2821 = vst [vmem:[#allocation31_spill] sm:$0xff] %v2411_v50  ;;  %2822 = vst [vmem:[#allocation32_spill] sm:$0xff] %v2414_v51  ;;  %v2416_v14 = vadd.f32 %v218_v55, %v80_v58  ;;  %v2419_v2 = vadd.f32 %v291_v61, %v2348_v54  ;;  %v260_v58 = vadd.f32 %v2352_v57, %v2354_v59 }
 0x102   :  { %v220_v3 = vpop.f32.mrf.mxu0  ;;  %v293_v25 = vpop.f32.mrf.mxu1 }
 0x103   :  { %2823 = vst [vmem:[#allocation33_spill] sm:$0xff] %v2416_v14  ;;  %2824 = vst [vmem:[#allocation34_spill] sm:$0xff] %v2419_v2  ;;  %v2422_v43 = vadd.f32 %v220_v3, %v84_v62  ;;  %v2425_v44 = vadd.f32 %v293_v25, %v2354_v59 }
 0x104   :  { %v568_v48 = vpop.f32.mrf.mxu0 }
 0x105   :  { %v616_v51 = vadd.f32 %v568_v48, %v185_v47  ;;  %v609_v50 = vpop.f32.mrf.mxu1 }
 0x106   :  { %v570_v60 = vpop.f32.mrf.mxu0  ;;  %v618_v25 = vadd.f32 %v609_v50, %v258_v56 }
 0x107   :  { %v1732_v55 = vmul.f32 -1.442695, %v616_v51  ;;  %v617_v14 = vadd.f32 %v570_v60, %v187_v0  ;;  %v611_v49 = vpop.f32.mrf.mxu1 }
 0x108   :  { %v572_v61 = vpop.f32.mrf.mxu0  ;;  %v619_v3 = vadd.f32 %v611_v49, %v260_v58  ;;  %v2842_v40 = vld [vmem:[#allocation32_spill] sm:$0xff] }
 0x109   :  { %1873 = vpow2.f32 %v1732_v55  ;;  %v1733_v2 = vmul.f32 -1.442695, %v617_v14  ;;  %v613_v39 = vpop.f32.mrf.mxu1  ;;  %v2825_v61 = vmov 0  }
 0x10a   :  { %v573_v46 = vpop.f32.mrf.mxu0  ;;  %v1734_v62 = vmul.f32 -1.442695, %v619_v3 }
 0x10b   :  { %1875 = vpow2.f32 %v1733_v2  ;;  %v614_v52 = vpop.f32.mrf.mxu1 }
 0x10c   :  { %1877 = vpow2.f32 %v1734_v62  ;;  %v900_v52 = vsel %vm899_vm3, 1, %v2825_v61 }
 0x10d   :  { %902 = vperm.xlu1 %1806, %v900_v52  }
 0x116   :  { %v1874_v47 = vpop.eup %1873 }
 0x117   :  { %v623_v51 = vadd.f32 1.0, %v1874_v47 }
 0x118   :  { %v1876_v60 = vpop.eup %1875 }
 0x119   :  { %1879 = vrcp.f32 %v623_v51  ;;  %v629_v48 = vadd.f32 1.0, %v1876_v60  ;;  %v1878_v39 = vpop.eup %1877 }
 0x11a   :  { %1881 = vtanh.f32 %v618_v25  ;;  %v636_v0 = vadd.f32 1.0, %v1878_v39 }
 0x11b   :  { %1883 = vrcp.f32 %v629_v48 }
 0x11c   :  { %1885 = vrcp.f32 %v636_v0 }
 0x126   :  { %v1880_v46 = vpop.eup %1879 }
 0x127   :  { %v1882_v14 = vpop.eup %1881 }
 0x128   :  { %v1884_v2 = vpop.eup %1883  ;;  %v640_v59 = vmul.f32 %v1882_v14, %v1880_v46 }
 0x129   :  { %v639_v57 = vmul.f32 0.0, %v1884_v2  ;;  %v1886_v53 = vpop.eup %1885 }
 0x12b   :  { %v2432_v49 = vadd.f32 %v640_v59, %v639_v57 }
 0x12d   :  { %1887 = vtanh.f32 %v2432_v49 }
 0x13a   :  { %v1888_v54 = vpop.eup %1887 }
 0x13b   :  { %v2435_v50 = vmul.f32 %v1888_v54, %v1886_v53 }
 0x13d   :  { %v659_v55 = vpack.c.bf16 %v2435_v50, %v2435_v50 }
 0x13f   :  { %693 = vmatmul.mubr.bf16.vlgmr.msra.gmra.mxu0 %v659_v55  ;;  %734 = vmatmul.mubr.bf16.vlgmr.msra.gmra.mxu1 %v659_v55 }
 0x140   :  { %788 = vmatpush1.bf16.msra.mxu0 %v2179_v8  ;;  %829 = vmatpush1.bf16.msra.mxu1 %v2182_v9 }
 0x141   :  { %789 = vmatprep.subr.bf16.mxu0 %v2186_v10  ;;  %830 = vmatprep.subr.bf16.mxu1 %v2190_v11 }
 0x142   :  { %819 = vmatprep.mubr.bf16.mxu0 %v2825_v61  ;;  %860 = vmatprep.mubr.bf16.mxu1 %v2825_v61 }
 0x144   :  { %790 = vmatpush1.bf16.msra.mxu0 %v2192_v12  ;;  %831 = vmatpush1.bf16.msra.mxu1 %v2194_v13 }
 0x145   :  { %791 = vmatprep.subr.bf16.mxu0 %v2203_v15  ;;  %832 = vmatprep.subr.bf16.mxu1 %v2206_v16 }
 0x148   :  { %792 = vmatpush1.bf16.msra.mxu0 %v2209_v17  ;;  %833 = vmatpush1.bf16.msra.mxu1 %v2211_v18 }
 0x149   :  { %793 = vmatprep.subr.bf16.mxu0 %v2215_v19  ;;  %834 = vmatprep.subr.bf16.mxu1 %v2218_v20 }
 0x14c   :  { %794 = vmatpush1.bf16.msra.mxu0 %v2222_v21  ;;  %835 = vmatpush1.bf16.msra.mxu1 %v2225_v22 }
 0x14d   :  { %795 = vmatprep.subr.bf16.mxu0 %v2230_v23  ;;  %836 = vmatprep.subr.bf16.mxu1 %v2234_v24 }
 0x150   :  { %796 = vmatpush1.bf16.msra.mxu0 %v2240_v26  ;;  %837 = vmatpush1.bf16.msra.mxu1 %v2244_v27 }
 0x151   :  { %797 = vmatprep.subr.bf16.mxu0 %v2246_v28  ;;  %838 = vmatprep.subr.bf16.mxu1 %v2249_v29 }
 0x154   :  { %798 = vmatpush1.bf16.msra.mxu0 %v2254_v30  ;;  %839 = vmatpush1.bf16.msra.mxu1 %v2256_v31 }
 0x155   :  { %799 = vmatprep.subr.bf16.mxu0 %v2264_v33  ;;  %840 = vmatprep.subr.bf16.mxu1 %v2268_v34 }
 0x158   :  { %800 = vmatpush1.bf16.msra.mxu0 %v2270_v35  ;;  %841 = vmatpush1.bf16.msra.mxu1 %v2272_v36 }
 0x159   :  { %801 = vmatprep.subr.bf16.mxu0 %v2274_v37  ;;  %842 = vmatprep.subr.bf16.mxu1 %v2277_v38 }
 0x15c   :  { %802 = vmatpush1.bf16.msra.mxu0 %v2287_v41  ;;  %843 = vmatpush1.bf16.msra.mxu1 %v2291_v42 }
 0x15d   :  { %914 = vmatprep.subr.bf16.mxu0 %v2175_v6  ;;  %955 = vmatprep.subr.bf16.mxu1 %v2177_v7 }
 0x1ff   :  { %v694_v58 = vpop.f32.mrf.mxu0  ;;  %v735_v3 = vpop.f32.mrf.mxu1 }
 0x200   :  { %v742_v56 = vadd.f32 %v694_v58, %v2356_v63  ;;  %v744_v0 = vadd.f32 %v735_v3, %v2359_v1  ;;  %v649_v1 = vpop.permute.xlu0 %648 }
 0x201   :  { %v696_v62 = vpop.f32.mrf.mxu0  ;;  %v737_v47 = vpop.f32.mrf.mxu1  ;;  %vm650_vm4 = vcmp.eq.s32.totalorder %v649_v1, 1 }
 0x202   :  { %v1735_v25 = vmul.f32 -1.442695, %v742_v56  ;;  %v743_v51 = vadd.f32 %v696_v62, %v2361_v4  ;;  %v745_v2 = vadd.f32 %v737_v47, %v2364_v5 }
 0x203   :  { %v698_v60 = vpop.f32.mrf.mxu0  ;;  %v739_v48 = vpop.f32.mrf.mxu1 }
 0x204   :  { %1889 = vpow2.f32 %v1735_v25  ;;  %v1736_v39 = vmul.f32 -1.442695, %v743_v51  ;;  %v1737_v57 = vmul.f32 -1.442695, %v745_v2  ;;  %v776_v3 = vpop.permute.xlu0 %775  ;;  %v651_v48 = vsel %vm650_vm4, %v2435_v50, 0.0 }
 0x205   :  { %v699_v46 = vpop.f32.mrf.mxu0  ;;  %v740_v14 = vpop.f32.mrf.mxu1  ;;  %vm777_vm5 = vcmp.eq.s32.totalorder %v776_v3, 1 }
 0x206   :  { %1891 = vpow2.f32 %v1736_v39 }
 0x207   :  { %1893 = vtanh.f32 %v744_v0 }
 0x208   :  { %1895 = vpow2.f32 %v1737_v57 }
 0x211   :  { %v1890_v59 = vpop.eup %1889 }
 0x212   :  { %v749_v53 = vadd.f32 1.0, %v1890_v59 }
 0x213   :  { %v1892_v63 = vpop.eup %1891 }
 0x214   :  { %1897 = vrcp.f32 %v749_v53  ;;  %v755_v54 = vadd.f32 1.0, %v1892_v63  ;;  %v1894_v4 = vpop.eup %1893 }
 0x215   :  { %v1896_v55 = vpop.eup %1895 }
 0x216   :  { %1899 = vrcp.f32 %v755_v54  ;;  %v762_v62 = vadd.f32 1.0, %v1896_v55 }
 0x218   :  { %1901 = vrcp.f32 %v762_v62  ;;  %v2827_v62 = vld [vmem:[#allocation15_spill] sm:$0xff] }
 0x221   :  { %v1898_v52 = vpop.eup %1897 }
 0x222   :  { %v766_v58 = vmul.f32 %v1898_v52, %v1894_v4 }
 0x223   :  { %v1900_v56 = vpop.eup %1899 }
 0x224   :  { %v765_v25 = vmul.f32 %v1900_v56, %v2432_v49  ;;  %v1027_v49 = vsel %vm1026_vm6, 1, %v2825_v61 }
 0x225   :  { %v1902_v47 = vpop.eup %1901  ;;  %1029 = vperm.xlu1 %1806, %v1027_v49  }
 0x226   :  { %v2480_v5 = vadd.f32 %v766_v58, %v765_v25  ;;  %v2826_v58 = vld [vmem:[#allocation16_spill] sm:$0xff] }
 0x228   :  { %1903 = vtanh.f32 %v2480_v5 }
 0x235   :  { %v1904_v51 = vpop.eup %1903 }
 0x236   :  { %v769_v60 = vmul.f32 %v1904_v51, %v1902_v47 }
 0x238   :  { %v2484_v39 = vsel %vm777_vm5, %v769_v60, %v651_v48  ;;  %v786_v46 = vpack.c.bf16 %v769_v60, %v769_v60 }
 0x23a   :  { %820 = vmatmul.mubr.bf16.vlgmr.msra.gmra.mxu0 %v786_v46  ;;  %861 = vmatmul.mubr.bf16.vlgmr.msra.gmra.mxu1 %v786_v46 }
 0x23b   :  { %915 = vmatpush1.bf16.msra.mxu0 %v2179_v8  ;;  %956 = vmatpush1.bf16.msra.mxu1 %v2182_v9 }
 0x23c   :  { %916 = vmatprep.subr.bf16.mxu0 %v2186_v10  ;;  %957 = vmatprep.subr.bf16.mxu1 %v2190_v11 }
 0x23d   :  { %946 = vmatprep.mubr.bf16.mxu0 %v2825_v61  ;;  %987 = vmatprep.mubr.bf16.mxu1 %v2825_v61 }
 0x23f   :  { %917 = vmatpush1.bf16.msra.mxu0 %v2192_v12  ;;  %958 = vmatpush1.bf16.msra.mxu1 %v2194_v13 }
 0x240   :  { %918 = vmatprep.subr.bf16.mxu0 %v2203_v15  ;;  %959 = vmatprep.subr.bf16.mxu1 %v2206_v16 }
 0x243   :  { %919 = vmatpush1.bf16.msra.mxu0 %v2209_v17  ;;  %960 = vmatpush1.bf16.msra.mxu1 %v2211_v18 }
 0x244   :  { %920 = vmatprep.subr.bf16.mxu0 %v2215_v19  ;;  %961 = vmatprep.subr.bf16.mxu1 %v2218_v20 }
 0x247   :  { %921 = vmatpush1.bf16.msra.mxu0 %v2222_v21  ;;  %962 = vmatpush1.bf16.msra.mxu1 %v2225_v22 }
 0x248   :  { %922 = vmatprep.subr.bf16.mxu0 %v2230_v23  ;;  %963 = vmatprep.subr.bf16.mxu1 %v2234_v24 }
 0x24b   :  { %923 = vmatpush1.bf16.msra.mxu0 %v2240_v26  ;;  %964 = vmatpush1.bf16.msra.mxu1 %v2244_v27 }
 0x24c   :  { %924 = vmatprep.subr.bf16.mxu0 %v2246_v28  ;;  %965 = vmatprep.subr.bf16.mxu1 %v2249_v29 }
 0x24f   :  { %925 = vmatpush1.bf16.msra.mxu0 %v2254_v30  ;;  %966 = vmatpush1.bf16.msra.mxu1 %v2256_v31 }
 0x250   :  { %926 = vmatprep.subr.bf16.mxu0 %v2264_v33  ;;  %967 = vmatprep.subr.bf16.mxu1 %v2268_v34 }
 0x253   :  { %927 = vmatpush1.bf16.msra.mxu0 %v2270_v35  ;;  %968 = vmatpush1.bf16.msra.mxu1 %v2272_v36 }
 0x254   :  { %928 = vmatprep.subr.bf16.mxu0 %v2274_v37  ;;  %969 = vmatprep.subr.bf16.mxu1 %v2277_v38 }
 0x257   :  { %929 = vmatpush1.bf16.msra.mxu0 %v2287_v41  ;;  %970 = vmatpush1.bf16.msra.mxu1 %v2291_v42 }
 0x258   :  { %1041 = vmatprep.subr.bf16.mxu0 %v2175_v6  ;;  %1082 = vmatprep.subr.bf16.mxu1 %v2177_v7 }
 0x2fa   :  { %v821_v50 = vpop.f32.mrf.mxu0  ;;  %v862_v14 = vpop.f32.mrf.mxu1 }
 0x2fb   :  { %v869_v2 = vadd.f32 %v821_v50, %v2366_v32  ;;  %v871_v25 = vadd.f32 %v862_v14, %v2827_v62  ;;  %v903_v14 = vpop.permute.xlu1 %902 }
 0x2fc   :  { %v823_v0 = vpop.f32.mrf.mxu0  ;;  %v864_v57 = vpop.f32.mrf.mxu1  ;;  %vm904_vm7 = vcmp.eq.s32.totalorder %v903_v14, 1 }
 0x2fd   :  { %v1738_v59 = vmul.f32 -1.442695, %v869_v2  ;;  %v870_v53 = vadd.f32 %v823_v0, %v2371_v45  ;;  %v872_v56 = vadd.f32 %v864_v57, %v2826_v58 }
 0x2fe   :  { %v825_v63 = vpop.f32.mrf.mxu0  ;;  %v866_v54 = vpop.f32.mrf.mxu1 }
 0x2ff   :  { %1905 = vpow2.f32 %v1738_v59  ;;  %v1739_v4 = vmul.f32 -1.442695, %v870_v53  ;;  %v1740_v1 = vmul.f32 -1.442695, %v872_v56 }
 0x300   :  { %v826_v55 = vpop.f32.mrf.mxu0  ;;  %v867_v52 = vpop.f32.mrf.mxu1 }
 0x301   :  { %1907 = vpow2.f32 %v1739_v4  ;;  %v2831_v55 = vld [vmem:[#allocation18_spill] sm:$0xff] }
 0x302   :  { %1909 = vtanh.f32 %v871_v25 }
 0x303   :  { %1911 = vpow2.f32 %v1740_v1 }
 0x30c   :  { %v1906_v3 = vpop.eup %1905 }
 0x30d   :  { %v876_v47 = vadd.f32 1.0, %v1906_v3 }
 0x30e   :  { %v1908_v32 = vpop.eup %1907 }
 0x30f   :  { %1913 = vrcp.f32 %v876_v47  ;;  %v882_v51 = vadd.f32 1.0, %v1908_v32  ;;  %v1910_v45 = vpop.eup %1909 }
 0x310   :  { %v1912_v60 = vpop.eup %1911 }
 0x311   :  { %1915 = vrcp.f32 %v882_v51  ;;  %v889_v50 = vadd.f32 1.0, %v1912_v60 }
 0x313   :  { %1917 = vrcp.f32 %v889_v50 }
 0x31c   :  { %v1914_v48 = vpop.eup %1913 }
 0x31d   :  { %v893_v46 = vmul.f32 %v1914_v48, %v1910_v45 }
 0x31e   :  { %v1916_v49 = vpop.eup %1915 }
 0x31f   :  { %v892_v2 = vmul.f32 %v1916_v49, %v2480_v5  ;;  %v1030_v49 = vpop.permute.xlu1 %1029 }
 0x320   :  { %v1918_v57 = vpop.eup %1917  ;;  %vm1031_vm9 = vcmp.eq.s32.totalorder %v1030_v49, 1  ;;  %v2675_v49 = vld [vmem:[#allocation6 + $0x64] ss:$16 sps:$4 sm:$0xff]  }
 0x321   :  { %v2527_v0 = vadd.f32 %v893_v46, %v892_v2 }
 0x323   :  { %1919 = vtanh.f32 %v2527_v0 }
 0x330   :  { %v1920_v59 = vpop.eup %1919 }
 0x331   :  { %v896_v53 = vmul.f32 %v1920_v59, %v1918_v57 }
 0x333   :  { %v2531_v63 = vsel %vm904_vm7, %v896_v53, %v2484_v39  ;;  %v913_v54 = vpack.c.bf16 %v896_v53, %v896_v53  ;;  %v2830_v39 = vld [vmem:[#allocation20_spill] sm:$0xff] }
 0x334   :  { %v2580_v53 = vld [vmem:[#allocation6 + $0xe0] ss:$16 sps:$4 sm:$0xff]  }
 0x335   :  { %947 = vmatmul.mubr.bf16.vlgmr.msra.gmra.mxu0 %v913_v54  ;;  %988 = vmatmul.mubr.bf16.vlgmr.msra.gmra.mxu1 %v913_v54  ;;  %v2586_v54 = vld [vmem:[#allocation6 + $0xc4] ss:$16 sps:$4 sm:$0xff]  }
 0x336   :  { %1042 = vmatpush1.bf16.msra.mxu0 %v2179_v8  ;;  %1083 = vmatpush1.bf16.msra.mxu1 %v2182_v9  ;;  %v1154_v8 = vsel %vm1153_vm8, 1, %v2825_v61 }
 0x337   :  { %1043 = vmatprep.subr.bf16.mxu0 %v2186_v10  ;;  %1084 = vmatprep.subr.bf16.mxu1 %v2190_v11  ;;  %v2828_v11 = vld [vmem:[#allocation17_spill] sm:$0xff] }
 0x338   :  { %1073 = vmatprep.mubr.bf16.mxu0 %v2825_v61  ;;  %1114 = vmatprep.mubr.bf16.mxu1 %v2825_v61 }
 0x339   :  { %1156 = vperm.xlu0 %1805, %v1154_v8   ;;  %v2589_v8 = vld [vmem:[#allocation6 + $0xcc] ss:$16 sps:$4 sm:$0xff]  }
 0x33a   :  { %1044 = vmatpush1.bf16.msra.mxu0 %v2192_v12  ;;  %1085 = vmatpush1.bf16.msra.mxu1 %v2194_v13 }
 0x33b   :  { %1045 = vmatprep.subr.bf16.mxu0 %v2203_v15  ;;  %1086 = vmatprep.subr.bf16.mxu1 %v2206_v16 }
 0x33e   :  { %1046 = vmatpush1.bf16.msra.mxu0 %v2209_v17  ;;  %1087 = vmatpush1.bf16.msra.mxu1 %v2211_v18  ;;  %v2829_v17 = vld [vmem:[#allocation19_spill] sm:$0xff] }
 0x33f   :  { %1047 = vmatprep.subr.bf16.mxu0 %v2215_v19  ;;  %1088 = vmatprep.subr.bf16.mxu1 %v2218_v20 }
 0x342   :  { %1048 = vmatpush1.bf16.msra.mxu0 %v2222_v21  ;;  %1089 = vmatpush1.bf16.msra.mxu1 %v2225_v22 }
 0x343   :  { %1049 = vmatprep.subr.bf16.mxu0 %v2230_v23  ;;  %1090 = vmatprep.subr.bf16.mxu1 %v2234_v24 }
 0x346   :  { %1050 = vmatpush1.bf16.msra.mxu0 %v2240_v26  ;;  %1091 = vmatpush1.bf16.msra.mxu1 %v2244_v27 }
 0x347   :  { %1051 = vmatprep.subr.bf16.mxu0 %v2246_v28  ;;  %1092 = vmatprep.subr.bf16.mxu1 %v2249_v29 }
 0x34a   :  { %1052 = vmatpush1.bf16.msra.mxu0 %v2254_v30  ;;  %1093 = vmatpush1.bf16.msra.mxu1 %v2256_v31 }
 0x34b   :  { %1053 = vmatprep.subr.bf16.mxu0 %v2264_v33  ;;  %1094 = vmatprep.subr.bf16.mxu1 %v2268_v34 }
 0x34e   :  { %1054 = vmatpush1.bf16.msra.mxu0 %v2270_v35  ;;  %1095 = vmatpush1.bf16.msra.mxu1 %v2272_v36 }
 0x34f   :  { %1055 = vmatprep.subr.bf16.mxu0 %v2274_v37  ;;  %1096 = vmatprep.subr.bf16.mxu1 %v2277_v38 }
 0x352   :  { %1056 = vmatpush1.bf16.msra.mxu0 %v2287_v41  ;;  %1097 = vmatpush1.bf16.msra.mxu1 %v2291_v42 }
 0x353   :  { %1168 = vmatprep.subr.bf16.mxu0 %v2175_v6  ;;  %1209 = vmatprep.subr.bf16.mxu1 %v2177_v7 }
 0x3f5   :  { %v948_v9 = vpop.f32.mrf.mxu0  ;;  %v989_v10 = vpop.f32.mrf.mxu1 }
 0x3f6   :  { %v996_v12 = vadd.f32 %v948_v9, %v2828_v11  ;;  %v998_v52 = vadd.f32 %v989_v10, %v2831_v55  ;;  %v2597_v9 = vld [vmem:[#allocation6 + $0xc8] ss:$16 sps:$4 sm:$0xff]   ;;  %v2600_v10 = vld [vmem:[#allocation6 + $0xa4] ss:$16 sps:$4 sm:$0xff]   ;;  %v2603_v11 = vld [vmem:[#allocation6 + $0xac] ss:$16 sps:$4 sm:$0xff]  }
 0x3f7   :  { %v950_v13 = vpop.f32.mrf.mxu0  ;;  %v991_v15 = vpop.f32.mrf.mxu1 }
 0x3f8   :  { %v1741_v16 = vmul.f32 -1.442695, %v996_v12  ;;  %v997_v18 = vadd.f32 %v950_v13, %v2829_v17  ;;  %v999_v4 = vadd.f32 %v991_v15, %v2830_v39  ;;  %v2606_v12 = vld [vmem:[#allocation6 + $0xa0] ss:$16 sps:$4 sm:$0xff]   ;;  %v2609_v13 = vld [vmem:[#allocation6 + $0xa8] ss:$16 sps:$4 sm:$0xff]  }
 0x3f9   :  { %v952_v19 = vpop.f32.mrf.mxu0  ;;  %v993_v20 = vpop.f32.mrf.mxu1  ;;  %v2612_v15 = vld [vmem:[#allocation6 + $0x84] ss:$16 sps:$4 sm:$0xff]  }
 0x3fa   :  { %1921 = vpow2.f32 %v1741_v16  ;;  %v1742_v6 = vmul.f32 -1.442695, %v997_v18  ;;  %v1743_v58 = vmul.f32 -1.442695, %v999_v4  ;;  %v2615_v16 = vld [vmem:[#allocation6 + $0x8c] ss:$16 sps:$4 sm:$0xff]  }
 0x3fb   :  { %v953_v5 = vpop.f32.mrf.mxu0  ;;  %v994_v7 = vpop.f32.mrf.mxu1  ;;  %v2835_v18 = vld [vmem:[#allocation22_spill] sm:$0xff] }
 0x3fc   :  { %1923 = vpow2.f32 %v1742_v6 }
 0x3fd   :  { %1925 = vtanh.f32 %v998_v52 }
 0x3fe   :  { %1927 = vpow2.f32 %v1743_v58 }
 0x407   :  { %v1922_v56 = vpop.eup %1921 }
 0x408   :  { %v1003_v62 = vadd.f32 1.0, %v1922_v56 }
 0x409   :  { %v1924_v25 = vpop.eup %1923 }
 0x40a   :  { %1929 = vrcp.f32 %v1003_v62  ;;  %v1009_v1 = vadd.f32 1.0, %v1924_v25  ;;  %v1926_v3 = vpop.eup %1925 }
 0x40b   :  { %v1928_v47 = vpop.eup %1927 }
 0x40c   :  { %1931 = vrcp.f32 %v1009_v1  ;;  %v1016_v60 = vadd.f32 1.0, %v1928_v47 }
 0x40e   :  { %1933 = vrcp.f32 %v1016_v60 }
 0x417   :  { %v1930_v32 = vpop.eup %1929 }
 0x418   :  { %v1020_v51 = vmul.f32 %v1930_v32, %v1926_v3  ;;  %v1157_v3 = vpop.permute.xlu0 %1156 }
 0x419   :  { %v1932_v45 = vpop.eup %1931  ;;  %vm1158_vm11 = vcmp.eq.s32.totalorder %v1157_v3, 1 }
 0x41a   :  { %v1019_v48 = vmul.f32 %v1932_v45, %v2527_v0  ;;  %v2583_v0 = vld [vmem:[#allocation6 + $0xe8] ss:$16 sps:$4 sm:$0xff]  }
 0x41b   :  { %v1934_v50 = vpop.eup %1933 }
 0x41c   :  { %v2574_v46 = vadd.f32 %v1020_v51, %v1019_v48  ;;  %v2669_v48 = vld [vmem:[#allocation6 + $0x80] ss:$16 sps:$4 sm:$0xff]  }
 0x41e   :  { %1935 = vtanh.f32 %v2574_v46 }
 0x42b   :  { %v1936_v2 = vpop.eup %1935 }
 0x42c   :  { %v1023_v14 = vmul.f32 %v1936_v2, %v1934_v50  ;;  %v2678_v50 = vld [vmem:[#allocation6 + $0x6c] ss:$16 sps:$4 sm:$0xff]   ;;  %v2681_v2 = vld [vmem:[#allocation6 + $0x60] ss:$16 sps:$4 sm:$0xff]  }
 0x42e   :  { %v2578_v57 = vsel %vm1031_vm9, %v1023_v14, %v2531_v63  ;;  %v1040_v59 = vpack.c.bf16 %v1023_v14, %v1023_v14  ;;  %v2594_v63 = vld [vmem:[#allocation6 + $0xc0] ss:$16 sps:$4 sm:$0xff]   ;;  %v2684_v14 = vld [vmem:[#allocation6 + $0x68] ss:$16 sps:$4 sm:$0xff]  }
 0x430   :  { %1074 = vmatmul.mubr.bf16.vlgmr.msra.gmra.mxu0 %v1040_v59  ;;  %1115 = vmatmul.mubr.bf16.vlgmr.msra.gmra.mxu1 %v1040_v59  ;;  %v2690_v59 = vld [vmem:[#allocation6 + $0x4c] ss:$16 sps:$4 sm:$0xff]  }
 0x431   :  { %1169 = vmatpush1.bf16.msra.mxu0 %v2580_v53  ;;  %1210 = vmatpush1.bf16.msra.mxu1 %v2583_v0 }
 0x432   :  { %1170 = vmatprep.subr.bf16.mxu0 %v2586_v54  ;;  %1211 = vmatprep.subr.bf16.mxu1 %v2589_v8 }
 0x433   :  { %1200 = vmatprep.mubr.bf16.mxu0 %v2825_v61  ;;  %1241 = vmatprep.mubr.bf16.mxu1 %v2825_v61 }
 0x435   :  { %1171 = vmatpush1.bf16.msra.mxu0 %v2594_v63  ;;  %1212 = vmatpush1.bf16.msra.mxu1 %v2597_v9 }
 0x436   :  { %1172 = vmatprep.subr.bf16.mxu0 %v2600_v10  ;;  %1213 = vmatprep.subr.bf16.mxu1 %v2603_v11 }
 0x439   :  { %1173 = vmatpush1.bf16.msra.mxu0 %v2606_v12  ;;  %1214 = vmatpush1.bf16.msra.mxu1 %v2609_v13 }
 0x43a   :  { %1174 = vmatprep.subr.bf16.mxu0 %v2612_v15  ;;  %1215 = vmatprep.subr.bf16.mxu1 %v2615_v16 }
 0x43d   :  { %1175 = vmatpush1.bf16.msra.mxu0 %v2222_v21  ;;  %1216 = vmatpush1.bf16.msra.mxu1 %v2225_v22  ;;  %v2636_v21 = vld [vmem:[#allocation6 + $0xe4] ss:$16 sps:$4 sm:$0xff]   ;;  %v2639_v22 = vld [vmem:[#allocation6 + $0xec] ss:$16 sps:$4 sm:$0xff]  }
 0x43e   :  { %1176 = vmatprep.subr.bf16.mxu0 %v2230_v23  ;;  %1217 = vmatprep.subr.bf16.mxu1 %v2234_v24  ;;  %v1281_v23 = vsel %vm1280_vm10, 1, %v2825_v61 }
 0x43f   :  { %1283 = vperm.xlu1 %1806, %v1281_v23   ;;  %v2693_v23 = vld [vmem:[#allocation6 + $0x40] ss:$16 sps:$4 sm:$0xff]  }
 0x441   :  { %1177 = vmatpush1.bf16.msra.mxu0 %v2240_v26  ;;  %1218 = vmatpush1.bf16.msra.mxu1 %v2244_v27  ;;  %v2832_v27 = vld [vmem:[#allocation21_spill] sm:$0xff] }
 0x442   :  { %1178 = vmatprep.subr.bf16.mxu0 %v2246_v28  ;;  %1219 = vmatprep.subr.bf16.mxu1 %v2249_v29 }
 0x445   :  { %1179 = vmatpush1.bf16.msra.mxu0 %v2254_v30  ;;  %1220 = vmatpush1.bf16.msra.mxu1 %v2256_v31 }
 0x446   :  { %1180 = vmatprep.subr.bf16.mxu0 %v2264_v33  ;;  %1221 = vmatprep.subr.bf16.mxu1 %v2268_v34  ;;  %v2833_v33 = vld [vmem:[#allocation23_spill] sm:$0xff] }
 0x449   :  { %1181 = vmatpush1.bf16.msra.mxu0 %v2270_v35  ;;  %1222 = vmatpush1.bf16.msra.mxu1 %v2272_v36 }
 0x44a   :  { %1182 = vmatprep.subr.bf16.mxu0 %v2274_v37  ;;  %1223 = vmatprep.subr.bf16.mxu1 %v2277_v38 }
 0x44d   :  { %1183 = vmatpush1.bf16.msra.mxu0 %v2287_v41  ;;  %1224 = vmatpush1.bf16.msra.mxu1 %v2291_v42  ;;  %v2834_v42 = vld [vmem:[#allocation24_spill] sm:$0xff] }
 0x44e   :  { %1295 = vmatprep.subr.bf16.mxu0 %v2636_v21  ;;  %1336 = vmatprep.subr.bf16.mxu1 %v2639_v22 }
 0x4f0   :  { %v1075_v24 = vpop.f32.mrf.mxu0  ;;  %v1116_v26 = vpop.f32.mrf.mxu1 }
 0x4f1   :  { %v1123_v28 = vadd.f32 %v1075_v24, %v2832_v27  ;;  %v1125_v19 = vadd.f32 %v1116_v26, %v2835_v18  ;;  %v2696_v24 = vld [vmem:[#allocation6 + $0x48] ss:$16 sps:$4 sm:$0xff]   ;;  %v2699_v26 = vld [vmem:[#allocation6 + $0x24] ss:$16 sps:$4 sm:$0xff]   ;;  %v2702_v27 = vld [vmem:[#allocation6 + $0x2c] ss:$16 sps:$4 sm:$0xff]  }
 0x4f2   :  { %v1077_v29 = vpop.f32.mrf.mxu0  ;;  %v1118_v30 = vpop.f32.mrf.mxu1 }
 0x4f3   :  { %v1744_v31 = vmul.f32 -1.442695, %v1123_v28  ;;  %v1124_v34 = vadd.f32 %v1077_v29, %v2833_v33  ;;  %v1126_v17 = vadd.f32 %v1118_v30, %v2834_v42  ;;  %v2705_v28 = vld [vmem:[#allocation6 + $0x20] ss:$16 sps:$4 sm:$0xff]   ;;  %v2708_v29 = vld [vmem:[#allocation6 + $0x28] ss:$16 sps:$4 sm:$0xff]  }
 0x4f4   :  { %v1079_v35 = vpop.f32.mrf.mxu0  ;;  %v1120_v36 = vpop.f32.mrf.mxu1  ;;  %v2711_v30 = vld [vmem:[#allocation6 + $0x4] ss:$16 sps:$4 sm:$0xff]   ;;  %v2717_v33 = vld [vmem:[#allocation6] ss:$16 sps:$4 sm:$0xff]  }
 0x4f5   :  { %1937 = vpow2.f32 %v1744_v31  ;;  %v1745_v37 = vmul.f32 -1.442695, %v1124_v34  ;;  %v1746_v20 = vmul.f32 -1.442695, %v1126_v17  ;;  %v2714_v31 = vld [vmem:[#allocation6 + $0xc] ss:$16 sps:$4 sm:$0xff]  }
 0x4f6   :  { %v1080_v38 = vpop.f32.mrf.mxu0  ;;  %v1121_v41 = vpop.f32.mrf.mxu1  ;;  %v2720_v34 = vld [vmem:[#allocation6 + $0x8] ss:$16 sps:$4 sm:$0xff]   ;;  %v1408_v35 = vsel %vm1407_vm12, 1, %v2825_v61 }
 0x4f7   :  { %1939 = vpow2.f32 %v1745_v37  ;;  %1410 = vperm.xlu0 %1805, %v1408_v35   ;;  %v2836_v38 = vld [vmem:[#allocation25_spill] sm:$0xff] }
 0x4f8   :  { %1941 = vtanh.f32 %v1125_v19  ;;  %v2837_v19 = vld [vmem:[#allocation27_spill] sm:$0xff] }
 0x4f9   :  { %1943 = vpow2.f32 %v1746_v20 }
 0x502   :  { %v1938_v6 = vpop.eup %1937 }
 0x503   :  { %v1130_v5 = vadd.f32 1.0, %v1938_v6 }
 0x504   :  { %v1940_v7 = vpop.eup %1939 }
 0x505   :  { %1945 = vrcp.f32 %v1130_v5  ;;  %v1136_v39 = vadd.f32 1.0, %v1940_v7  ;;  %v1942_v4 = vpop.eup %1941 }
 0x506   :  { %v1944_v55 = vpop.eup %1943 }
 0x507   :  { %1947 = vrcp.f32 %v1136_v39  ;;  %v1143_v62 = vadd.f32 1.0, %v1944_v55  ;;  %v2838_v39 = vld [vmem:[#allocation28_spill] sm:$0xff]  ;;  %v2839_v55 = vld [vmem:[#allocation26_spill] sm:$0xff] }
 0x509   :  { %1949 = vrcp.f32 %v1143_v62 }
 0x512   :  { %v1946_v52 = vpop.eup %1945 }
 0x513   :  { %v1147_v58 = vmul.f32 %v1946_v52, %v1942_v4 }
 0x514   :  { %v1948_v56 = vpop.eup %1947 }
 0x515   :  { %v1146_v25 = vmul.f32 %v1948_v56, %v2574_v46  ;;  %v2672_v46 = vld [vmem:[#allocation6 + $0x88] ss:$16 sps:$4 sm:$0xff]  }
 0x516   :  { %v1950_v47 = vpop.eup %1949 }
 0x517   :  { %v2649_v1 = vadd.f32 %v1147_v58, %v1146_v25 }
 0x519   :  { %1951 = vtanh.f32 %v2649_v1 }
 0x526   :  { %v1952_v32 = vpop.eup %1951 }
 0x527   :  { %v1150_v51 = vmul.f32 %v1952_v32, %v1950_v47 }
 0x529   :  { %v2653_v45 = vsel %vm1158_vm11, %v1150_v51, %v2578_v57  ;;  %v1167_v60 = vpack.c.bf16 %v1150_v51, %v1150_v51  ;;  %v2687_v57 = vld [vmem:[#allocation6 + $0x44] ss:$16 sps:$4 sm:$0xff]  }
 0x52b   :  { %1201 = vmatmul.mubr.bf16.vlgmr.msra.gmra.mxu0 %v1167_v60  ;;  %1242 = vmatmul.mubr.bf16.vlgmr.msra.gmra.mxu1 %v1167_v60 }
 0x52c   :  { %1296 = vmatpush1.bf16.msra.mxu0 %v2580_v53  ;;  %1337 = vmatpush1.bf16.msra.mxu1 %v2583_v0 }
 0x52d   :  { %1297 = vmatprep.subr.bf16.mxu0 %v2586_v54  ;;  %1338 = vmatprep.subr.bf16.mxu1 %v2589_v8 }
 0x52e   :  { %1327 = vmatprep.mubr.bf16.mxu0 %v2825_v61  ;;  %1368 = vmatprep.mubr.bf16.mxu1 %v2825_v61 }
 0x530   :  { %1298 = vmatpush1.bf16.msra.mxu0 %v2594_v63  ;;  %1339 = vmatpush1.bf16.msra.mxu1 %v2597_v9 }
 0x531   :  { %1299 = vmatprep.subr.bf16.mxu0 %v2600_v10  ;;  %1340 = vmatprep.subr.bf16.mxu1 %v2603_v11 }
 0x534   :  { %1300 = vmatpush1.bf16.msra.mxu0 %v2606_v12  ;;  %1341 = vmatpush1.bf16.msra.mxu1 %v2609_v13 }
 0x535   :  { %1301 = vmatprep.subr.bf16.mxu0 %v2612_v15  ;;  %1342 = vmatprep.subr.bf16.mxu1 %v2615_v16 }
 0x538   :  { %1302 = vmatpush1.bf16.msra.mxu0 %v2669_v48  ;;  %1343 = vmatpush1.bf16.msra.mxu1 %v2672_v46 }
 0x539   :  { %1303 = vmatprep.subr.bf16.mxu0 %v2675_v49  ;;  %1344 = vmatprep.subr.bf16.mxu1 %v2678_v50 }
 0x53c   :  { %1304 = vmatpush1.bf16.msra.mxu0 %v2681_v2  ;;  %1345 = vmatpush1.bf16.msra.mxu1 %v2684_v14 }
 0x53d   :  { %1305 = vmatprep.subr.bf16.mxu0 %v2687_v57  ;;  %1346 = vmatprep.subr.bf16.mxu1 %v2690_v59 }
 0x540   :  { %1306 = vmatpush1.bf16.msra.mxu0 %v2693_v23  ;;  %1347 = vmatpush1.bf16.msra.mxu1 %v2696_v24 }
 0x541   :  { %1307 = vmatprep.subr.bf16.mxu0 %v2699_v26  ;;  %1348 = vmatprep.subr.bf16.mxu1 %v2702_v27 }
 0x544   :  { %1308 = vmatpush1.bf16.msra.mxu0 %v2705_v28  ;;  %1349 = vmatpush1.bf16.msra.mxu1 %v2708_v29 }
 0x545   :  { %1309 = vmatprep.subr.bf16.mxu0 %v2711_v30  ;;  %1350 = vmatprep.subr.bf16.mxu1 %v2714_v31 }
 0x548   :  { %1310 = vmatpush1.bf16.msra.mxu0 %v2717_v33  ;;  %1351 = vmatpush1.bf16.msra.mxu1 %v2720_v34 }
 0x549   :  { %1422 = vmatprep.subr.bf16.mxu0 %v2636_v21  ;;  %1463 = vmatprep.subr.bf16.mxu1 %v2639_v22 }
 0x5eb   :  { %v1202_v36 = vpop.f32.mrf.mxu0  ;;  %v1243_v37 = vpop.f32.mrf.mxu1 }
 0x5ec   :  { %v1250_v41 = vadd.f32 %v1202_v36, %v2836_v38  ;;  %v1252_v52 = vadd.f32 %v1243_v37, %v2839_v55  ;;  %v1284_v37 = vpop.permute.xlu1 %1283  ;;  %v1867_v55 = vld [vmem:[#allocation9 + $0x28] sm:$0xff]  }
 0x5ed   :  { %v1204_v42 = vpop.f32.mrf.mxu0  ;;  %v1245_v17 = vpop.f32.mrf.mxu1  ;;  %vm1285_vm13 = vcmp.eq.s32.totalorder %v1284_v37, 1 }
 0x5ee   :  { %v1747_v18 = vmul.f32 -1.442695, %v1250_v41  ;;  %v1251_v20 = vadd.f32 %v1204_v42, %v2837_v19  ;;  %v1253_v4 = vadd.f32 %v1245_v17, %v2838_v39  ;;  %v2107_v39 = vmov 0.0  }
 0x5ef   :  { %v1206_v6 = vpop.f32.mrf.mxu0  ;;  %v1247_v5 = vpop.f32.mrf.mxu1 }
 0x5f0   :  { %1953 = vpow2.f32 %v1747_v18  ;;  %v1748_v21 = vmul.f32 -1.442695, %v1251_v20  ;;  %v1749_v58 = vmul.f32 -1.442695, %v1253_v4  ;;  %v1866_v4 = vld [vmem:[#allocation9 + $0x30] sm:$0xff]  }
 0x5f1   :  { %v1207_v7 = vpop.f32.mrf.mxu0  ;;  %v1248_v22 = vpop.f32.mrf.mxu1 }
 0x5f2   :  { %1955 = vpow2.f32 %v1748_v21  ;;  %v1865_v22 = vld [vmem:[#allocation9 + $0x38] sm:$0xff]  }
 0x5f3   :  { %1957 = vtanh.f32 %v1252_v52  ;;  %v1868_v52 = vld [vmem:[#allocation9 + $0x20] sm:$0xff]  }
 0x5f4   :  { %1959 = vpow2.f32 %v1749_v58  ;;  %v1869_v58 = vld [vmem:[#allocation9 + $0x18] sm:$0xff]  }
 0x5fd   :  { %v1954_v56 = vpop.eup %1953 }
 0x5fe   :  { %v1257_v62 = vadd.f32 1.0, %v1954_v56  ;;  %v1870_v56 = vld [vmem:[#allocation9 + $0x10] sm:$0xff]  }
 0x5ff   :  { %v1956_v25 = vpop.eup %1955 }
 0x600   :  { %1961 = vrcp.f32 %v1257_v62  ;;  %v1263_v3 = vadd.f32 1.0, %v1956_v25  ;;  %v1958_v47 = vpop.eup %1957  ;;  %v1871_v62 = vld [vmem:[#allocation9 + $0x8] sm:$0xff]   ;;  %v1872_v25 = vld [vmem:[#allocation9] sm:$0xff]  }
 0x601   :  { %v1960_v32 = vpop.eup %1959 }
 0x602   :  { %1963 = vrcp.f32 %v1263_v3  ;;  %v1270_v36 = vadd.f32 1.0, %v1960_v32  ;;  %v2844_v32 = vld [vmem:[#allocation33_spill] sm:$0xff] }
 0x604   :  { %1965 = vrcp.f32 %v1270_v36 }
 0x60d   :  { %v1962_v51 = vpop.eup %1961 }
 0x60e   :  { %v1274_v60 = vmul.f32 %v1962_v51, %v1958_v47 }
 0x60f   :  { %v1964_v35 = vpop.eup %1963 }
 0x610   :  { %v1273_v38 = vmul.f32 %v1964_v35, %v2649_v1 }
 0x611   :  { %v1966_v42 = vpop.eup %1965 }
 0x612   :  { %v2732_v41 = vadd.f32 %v1274_v60, %v1273_v38 }
 0x614   :  { %1967 = vtanh.f32 %v2732_v41 }
 0x621   :  { %v1968_v17 = vpop.eup %1967 }
 0x622   :  { %v1277_v18 = vmul.f32 %v1968_v17, %v1966_v42 }
 0x624   :  { %v2736_v19 = vsel %vm1285_vm13, %v1277_v18, %v2653_v45  ;;  %v1294_v20 = vpack.c.bf16 %v1277_v18, %v1277_v18 }
 0x626   :  { %1328 = vmatmul.mubr.bf16.vlgmr.msra.gmra.mxu0 %v1294_v20  ;;  %1369 = vmatmul.mubr.bf16.vlgmr.msra.gmra.mxu1 %v1294_v20  ;;  %v2845_v20 = vld [vmem:[#allocation34_spill] sm:$0xff] }
 0x627   :  { %1423 = vmatpush1.bf16.msra.mxu0 %v2580_v53  ;;  %1464 = vmatpush1.bf16.msra.mxu1 %v2583_v0  ;;  %v1535_v53 = vsel %vm1534_vm14, 1, %v2825_v61 }
 0x628   :  { %1424 = vmatprep.subr.bf16.mxu0 %v2586_v54  ;;  %1465 = vmatprep.subr.bf16.mxu1 %v2589_v8  ;;  %v2840_v8 = vld [vmem:[#allocation29_spill] sm:$0xff] }
 0x629   :  { %1454 = vmatprep.mubr.bf16.mxu0 %v2825_v61  ;;  %1495 = vmatprep.mubr.bf16.mxu1 %v2825_v61  ;;  %v2843_v61 = vld [vmem:[#allocation30_spill] sm:$0xff] }
 0x62a   :  { %1537 = vperm.xlu1 %1806, %v1535_v53  }
 0x62b   :  { %1425 = vmatpush1.bf16.msra.mxu0 %v2594_v63  ;;  %1466 = vmatpush1.bf16.msra.mxu1 %v2597_v9 }
 0x62c   :  { %1426 = vmatprep.subr.bf16.mxu0 %v2600_v10  ;;  %1467 = vmatprep.subr.bf16.mxu1 %v2603_v11 }
 0x62f   :  { %1427 = vmatpush1.bf16.msra.mxu0 %v2606_v12  ;;  %1468 = vmatpush1.bf16.msra.mxu1 %v2609_v13  ;;  %v2841_v12 = vld [vmem:[#allocation31_spill] sm:$0xff] }
 0x630   :  { %1428 = vmatprep.subr.bf16.mxu0 %v2612_v15  ;;  %1469 = vmatprep.subr.bf16.mxu1 %v2615_v16 }
 0x633   :  { %1429 = vmatpush1.bf16.msra.mxu0 %v2669_v48  ;;  %1470 = vmatpush1.bf16.msra.mxu1 %v2672_v46 }
 0x634   :  { %1430 = vmatprep.subr.bf16.mxu0 %v2675_v49  ;;  %1471 = vmatprep.subr.bf16.mxu1 %v2678_v50 }
 0x637   :  { %1431 = vmatpush1.bf16.msra.mxu0 %v2681_v2  ;;  %1472 = vmatpush1.bf16.msra.mxu1 %v2684_v14 }
 0x638   :  { %1432 = vmatprep.subr.bf16.mxu0 %v2687_v57  ;;  %1473 = vmatprep.subr.bf16.mxu1 %v2690_v59 }
 0x63b   :  { %1433 = vmatpush1.bf16.msra.mxu0 %v2693_v23  ;;  %1474 = vmatpush1.bf16.msra.mxu1 %v2696_v24 }
 0x63c   :  { %1434 = vmatprep.subr.bf16.mxu0 %v2699_v26  ;;  %1475 = vmatprep.subr.bf16.mxu1 %v2702_v27 }
 0x63f   :  { %1435 = vmatpush1.bf16.msra.mxu0 %v2705_v28  ;;  %1476 = vmatpush1.bf16.msra.mxu1 %v2708_v29 }
 0x640   :  { %1436 = vmatprep.subr.bf16.mxu0 %v2711_v30  ;;  %1477 = vmatprep.subr.bf16.mxu1 %v2714_v31 }
 0x643   :  { %1437 = vmatpush1.bf16.msra.mxu0 %v2717_v33  ;;  %1478 = vmatpush1.bf16.msra.mxu1 %v2720_v34  ;;  %v1411_v33 = vpop.permute.xlu0 %1410 }
 0x644   :  { %vm1412_vm15 = vcmp.eq.s32.totalorder %v1411_v33, 1  ;;  %1774 = vmatprep.subr.bf16.mxu0 %v2107_v39 }
 0x6e6   :  { %v1329_v0 = vpop.f32.mrf.mxu0  ;;  %v1370_v54 = vpop.f32.mrf.mxu1 }
 0x6e7   :  { %v1377_v63 = vadd.f32 %v1329_v0, %v2840_v8  ;;  %v1379_v49 = vadd.f32 %v1370_v54, %v2843_v61 }
 0x6e8   :  { %v1331_v9 = vpop.f32.mrf.mxu0  ;;  %v1372_v10 = vpop.f32.mrf.mxu1 }
 0x6e9   :  { %v1750_v11 = vmul.f32 -1.442695, %v1377_v63  ;;  %v1378_v13 = vadd.f32 %v1331_v9, %v2841_v12  ;;  %v1380_v46 = vadd.f32 %v1372_v10, %v2842_v40 }
 0x6ea   :  { %v1333_v15 = vpop.f32.mrf.mxu0  ;;  %v1374_v16 = vpop.f32.mrf.mxu1 }
 0x6eb   :  { %1969 = vpow2.f32 %v1750_v11  ;;  %v1751_v1 = vmul.f32 -1.442695, %v1378_v13  ;;  %v1752_v50 = vmul.f32 -1.442695, %v1380_v46 }
 0x6ec   :  { %v1334_v45 = vpop.f32.mrf.mxu0  ;;  %v1375_v48 = vpop.f32.mrf.mxu1 }
 0x6ed   :  { %1971 = vpow2.f32 %v1751_v1  ;;  %v1538_v45 = vpop.permute.xlu1 %1537 }
 0x6ee   :  { %1973 = vtanh.f32 %v1379_v49  ;;  %vm1539_vm1 = vcmp.eq.s32.totalorder %v1538_v45, 1  ;;  %v1756_v49 = vld [vmem:[%s2801_s6] ss:$0 sm:$0xff] }
 0x6ef   :  { %1975 = vpow2.f32 %v1752_v50 }
 0x6f8   :  { %v1970_v2 = vpop.eup %1969 }
 0x6f9   :  { %v1384_v14 = vadd.f32 1.0, %v1970_v2 }
 0x6fa   :  { %v1972_v57 = vpop.eup %1971 }
 0x6fb   :  { %1977 = vrcp.f32 %v1384_v14  ;;  %v1390_v59 = vadd.f32 1.0, %v1972_v57  ;;  %v1974_v23 = vpop.eup %1973 }
 0x6fc   :  { %v1976_v24 = vpop.eup %1975 }
 0x6fd   :  { %1979 = vrcp.f32 %v1390_v59  ;;  %v1397_v29 = vadd.f32 1.0, %v1976_v24 }
 0x6ff   :  { %1981 = vrcp.f32 %v1397_v29 }
 0x708   :  { %v1978_v26 = vpop.eup %1977 }
 0x709   :  { %v1401_v27 = vmul.f32 %v1978_v26, %v1974_v23 }
 0x70a   :  { %v1980_v28 = vpop.eup %1979 }
 0x70b   :  { %v1400_v30 = vmul.f32 %v1980_v28, %v2732_v41 }
 0x70c   :  { %v1982_v34 = vpop.eup %1981 }
 0x70d   :  { %v2777_v31 = vadd.f32 %v1401_v27, %v1400_v30 }
 0x70f   :  { %1983 = vtanh.f32 %v2777_v31 }
 0x71c   :  { %v1984_v6 = vpop.eup %1983 }
 0x71d   :  { %v1404_v5 = vmul.f32 %v1984_v6, %v1982_v34 }
 0x71f   :  { %v2781_v21 = vsel %vm1412_vm15, %v1404_v5, %v2736_v19  ;;  %v1421_v7 = vpack.c.bf16 %v1404_v5, %v1404_v5 }
 0x721   :  { %1455 = vmatmul.mubr.bf16.vlgmr.msra.gmra.mxu0 %v1421_v7  ;;  %1496 = vmatmul.mubr.bf16.vlgmr.msra.gmra.mxu1 %v1421_v7 }
 0x722   :  { %1775 = vmatpush3.bf16.msra.mxu0 %v1865_v22  ;;  %1790 = vmatprep.mubr.msk.bf16.mxu0 %vm2108_vm0, %v2107_v39 }
 0x723   :  { %1776 = vmatprep.subr.bf16.mxu0 %v2107_v39 }
 0x726   :  { %1777 = vmatpush3.bf16.msra.mxu0 %v1866_v4 }
 0x727   :  { %1778 = vmatprep.subr.bf16.mxu0 %v2107_v39 }
 0x72a   :  { %1779 = vmatpush3.bf16.msra.mxu0 %v1867_v55 }
 0x72b   :  { %1780 = vmatprep.subr.bf16.mxu0 %v2107_v39 }
 0x72e   :  { %1781 = vmatpush3.bf16.msra.mxu0 %v1868_v52 }
 0x72f   :  { %1782 = vmatprep.subr.bf16.mxu0 %v2107_v39 }
 0x732   :  { %1783 = vmatpush3.bf16.msra.mxu0 %v1869_v58 }
 0x733   :  { %1784 = vmatprep.subr.bf16.mxu0 %v2107_v39 }
 0x736   :  { %1785 = vmatpush3.bf16.msra.mxu0 %v1870_v56 }
 0x737   :  { %1786 = vmatprep.subr.bf16.mxu0 %v2107_v39 }
 0x73a   :  { %1787 = vmatpush3.bf16.msra.mxu0 %v1871_v62 }
 0x73b   :  { %1788 = vmatprep.subr.bf16.mxu0 %v2107_v39 }
 0x73e   :  { %1789 = vmatpush3.bf16.msra.mxu0 %v1872_v25 }
 0x7e1   :  { %v1456_v3 = vpop.f32.mrf.mxu0  ;;  %v1497_v47 = vpop.f32.mrf.mxu1 }
 0x7e2   :  { %v1504_v51 = vadd.f32 %v1456_v3, %v2844_v32  ;;  %v1506_v53 = vadd.f32 %v1497_v47, %v2845_v20 }
 0x7e3   :  { %v1458_v60 = vpop.f32.mrf.mxu0  ;;  %v1499_v35 = vpop.f32.mrf.mxu1 }
 0x7e4   :  { %v1753_v36 = vmul.f32 -1.442695, %v1504_v51  ;;  %v1505_v38 = vadd.f32 %v1458_v60, %v2422_v43  ;;  %v1507_v19 = vadd.f32 %v1499_v35, %v2425_v44 }
 0x7e5   :  { %v1460_v41 = vpop.f32.mrf.mxu0  ;;  %v1501_v37 = vpop.f32.mrf.mxu1 }
 0x7e6   :  { %1985 = vpow2.f32 %v1753_v36  ;;  %v1754_v42 = vmul.f32 -1.442695, %v1505_v38  ;;  %v1755_v0 = vmul.f32 -1.442695, %v1507_v19 }
 0x7e7   :  { %v1461_v17 = vpop.f32.mrf.mxu0  ;;  %v1502_v18 = vpop.f32.mrf.mxu1 }
 0x7e8   :  { %1987 = vpow2.f32 %v1754_v42 }
 0x7e9   :  { %1989 = vtanh.f32 %v1506_v53 }
 0x7ea   :  { %1991 = vpow2.f32 %v1755_v0 }
 0x7f3   :  { %v1986_v54 = vpop.eup %1985 }
 0x7f4   :  { %v1511_v8 = vadd.f32 1.0, %v1986_v54 }
 0x7f5   :  { %v1988_v63 = vpop.eup %1987 }
 0x7f6   :  { %1993 = vrcp.f32 %v1511_v8  ;;  %v1517_v9 = vadd.f32 1.0, %v1988_v63  ;;  %v1990_v43 = vpop.eup %1989 }
 0x7f7   :  { %v1992_v10 = vpop.eup %1991 }
 0x7f8   :  { %1995 = vrcp.f32 %v1517_v9  ;;  %v1524_v15 = vadd.f32 1.0, %v1992_v10 }
 0x7fa   :  { %1997 = vrcp.f32 %v1524_v15 }
 0x803   :  { %v1994_v11 = vpop.eup %1993 }
 0x804   :  { %v1528_v12 = vmul.f32 %v1994_v11, %v1990_v43 }
 0x805   :  { %v1996_v13 = vpop.eup %1995 }
 0x806   :  { %v1527_v16 = vmul.f32 %v1996_v13, %v2777_v31 }
 0x807   :  { %v1998_v1 = vpop.eup %1997 }
 0x808   :  { %v1529_v44 = vadd.f32 %v1528_v12, %v1527_v16 }
 0x80a   :  { %1999 = vtanh.f32 %v1529_v44 }
 0x817   :  { %v2000_v48 = vpop.eup %1999 }
 0x818   :  { %v1531_v40 = vmul.f32 %v2000_v48, %v1998_v1 }
 0x81a   :  { %v1540_v46 = vsel %vm1539_vm1, %v1531_v40, %v2781_v21 }
 0x81b   :  { %v1547_v61 = vpack.c.bf16 %v1540_v46, %v1540_v46 }
 0x81d   :  { %1791 = vmatmul.mubr.bf16.vlgmr.msra.gmra.mxu0 %v1547_v61 }
 0x8dd   :  { %v1653_v50 = vpop.f32.mrf.mxu0 }
 0x8de   :  { %v1654_v2 = vadd.f32 %v1756_v49, %v1653_v50 }
 0x8df   :  { %v1792_v14 = vpop.f32.mrf.mxu0 }
 0x8e0   :  { %1659 = vst [vmem:[#allocation11] sm:$0xff] %v1654_v2 }
 0x8e1   :  { %v1656_v57 = vpop.f32.mrf.mxu0 }
 0x8e2   :  { %2084 = shalt.err (!%p2081_p0)
}
 0x8e3   :  { %1669 = dma.vmem_to_hbm [thread:$0]  %s1667_s9, 128, %s2802_s7, [#allocation8]   ;;  %v1793_v59 = vpop.f32.mrf.mxu0 }
 0x8e4   :  { %2097 = dma.done.wait [#allocation8], 128  }
 0x8e5   :  { %2098 = vsyncadd [#allocation8], 4294967168 }
 0x8e6   :  { %1673 = vsyncpa [#allocation7], 1 }
 0x8e7   :  { %1674 = vsyncpa [#allocation10], 1 }
 0x8e8   :  { %1675 = vsyncpa [#allocation8], 1 }

</bundles_post_ra>
